<compile_context>
chip_gen: v6e
topology: v6e:2x2x1
jax: 0.10.0
libtpu: 0.0.40
codegen_flags: <defaults>
</compile_context>

<pallas_src>
import functools

import jax
import jax.numpy as jnp
from jax.experimental import pallas as pl
from jax.experimental.pallas import tpu as pltpu

NEG_SLOPE = 0.02


def _down_kernel(x_ref, w_ref, shift_ref, o_ref):
    # x_ref:     (bn, 2, 2, Hp, Wp, Cin)  pool-window pre-split input
    # w_ref:     (9*Cin, Cout)            3x3 conv weights, tap-major, BN scale folded in
    # shift_ref: (1, Cout)                folded BatchNorm shift
    # o_ref:     (bn, Hp, Wp, Cout)
    bn, _, _, Hp, Wp, cin = x_ref.shape
    cout = o_ref.shape[-1]
    HW = Hp * Wp

    cols = []
    for i in range(bn):                      # bn is small & static -> unrolled
        # --- 2x2 max pool: elementwise max of the 4 window slabs (VPU) ---
        pooled = jnp.maximum(
            jnp.maximum(x_ref[i, 0, 0], x_ref[i, 0, 1]),
            jnp.maximum(x_ref[i, 1, 0], x_ref[i, 1, 1]))           # (Hp, Wp, Cin)

        # --- SAME zero padding built as a value: no scratch, each pad element
        #     written exactly once (no per-step re-zeroing of a pad buffer) ---
        zc = jnp.zeros((Hp, 1, cin), x_ref.dtype)
        zr = jnp.zeros((1, Wp + 2, cin), x_ref.dtype)
        padded = jnp.concatenate(
            [zr, jnp.concatenate([zc, pooled, zc], axis=1), zr],
            axis=0)                                                # (Hp+2, Wp+2, Cin)

        # --- im2col: 9 shifted views -> one (HW, 9*Cin) slab ---
        taps = [padded[dy:dy + Hp, dx:dx + Wp, :].reshape(HW, cin)
                for dy in range(3) for dx in range(3)]
        cols.append(jnp.concatenate(taps, axis=1))

    col = jnp.concatenate(cols, axis=0) if bn > 1 else cols[0]     # (bn*HW, 9*Cin)

    # --- single GEMM on the MXU (K = 9*Cin instead of 9 tiny K=Cin dots) ---
    acc = jnp.dot(col.astype(w_ref.dtype), w_ref[...],
                  preferred_element_type=jnp.float32)              # (bn*HW, Cout) f32

    # --- BN shift (scale already folded into w) + LeakyReLU(0.02) ---
    y = acc + shift_ref[...]
    y = jnp.where(y >= 0, y, NEG_SLOPE * y)
    o_ref[...] = y.reshape(bn, Hp, Wp, cout).astype(o_ref.dtype)


@functools.partial(jax.jit, static_argnames=("matmul_dtype",))
def down_forward(x_nchw, weight_oihw, gamma, beta, running_mean, running_var,
                 eps=1e-5, *, matmul_dtype=jnp.float32):
    """Pallas implementation of Down.forward (inference-mode BN).  NCHW in/out.

    matmul_dtype=jnp.bfloat16 halves activation DMA/VMEM and ~2x the MXU rate
    on v6e/v7x (accumulation stays f32); the default f32 matches PyTorch numerics.
    """
    N, Cin, H, W = x_nchw.shape
    assert H % 2 == 0 and W % 2 == 0, "MaxPool2d(2) path assumes even H, W"
    Cout = weight_oihw.shape[0]
    Hp, Wp = H // 2, W // 2

    # ---- glue: ONE fused layout transform  NCHW -> (N, 2, 2, Hp, Wp, Cin) ----
    # (for an NHWC end-to-end network this transpose disappears entirely)
    x_split = jnp.transpose(x_nchw.reshape(N, Cin, Hp, 2, Wp, 2),
                            (0, 3, 5, 2, 4, 1)).astype(matmul_dtype)

    # ---- fold inference BatchNorm into the conv weights + a per-channel shift ----
    # TODO(synk): training-mode BN (batch statistics) not implemented; running-stats form only.
    inv_std = jax.lax.rsqrt(running_var + eps)
    scale = gamma * inv_std                                            # (Cout,)
    shift = (beta - running_mean * scale).reshape(1, Cout).astype(jnp.float32)
    # OIHW -> (ky, kx, Cin, Cout) -> (9*Cin, Cout), BN scale folded in (exact)
    w_col = (jnp.transpose(weight_oihw, (2, 3, 1, 0)).reshape(9 * Cin, Cout)
             * scale[None, :]).astype(matmul_dtype)

    # ---- batch-block size: collapse the batch into as few grid steps as fit VMEM ----
    per_img = 4 * (2 * 4 * Hp * Wp * Cin + (Hp + 2) * (Wp + 2) * Cin
                   + 9 * Hp * Wp * Cin + 2 * Hp * Wp * Cout)
    budget = 8 * 1024 * 1024
    bn = 1
    for cand in range(min(N, 8), 0, -1):
        if N % cand == 0 and cand * per_img <= budget:
            bn = cand
            break
    # TODO(synk): for large images add a spatial row-slab grid axis with a 1-row halo
    # (bounds VMEM on v7x's 64 MiB and gives both TensorCores parallel work).

    out_nhwc = pl.pallas_call(
        _down_kernel,
        out_shape=jax.ShapeDtypeStruct((N, Hp, Wp, Cout), jnp.float32),
        grid_spec=pltpu.PrefetchScalarGridSpec(
            num_scalar_prefetch=0,
            grid=(N // bn,),
            in_specs=[
                pl.BlockSpec((bn, 2, 2, Hp, Wp, Cin),
                             lambda b: (b, 0, 0, 0, 0, 0)),
                pl.BlockSpec((9 * Cin, Cout), lambda b: (0, 0)),
                pl.BlockSpec((1, Cout), lambda b: (0, 0)),
            ],
            out_specs=pl.BlockSpec((bn, Hp, Wp, Cout), lambda b: (b, 0, 0, 0)),
        ),
        compiler_params=pltpu.CompilerParams(
            dimension_semantics=("parallel",),
            vmem_limit_bytes=32 * 1024 * 1024),
    )(x_split, w_col, shift)

    return jnp.transpose(out_nhwc, (0, 3, 1, 2))  # back to NCHW


def down_reference(x_nchw, weight_oihw, gamma, beta, running_mean, running_var,
                   eps=1e-5):
    """Pure-JAX reference (same inference-mode BN semantics)."""
    N, C, H, W = x_nchw.shape
    xp = x_nchw.reshape(N, C, H // 2, 2, W // 2, 2).max(axis=(3, 5))
    x_nhwc = jnp.transpose(xp, (0, 2, 3, 1))
    w_hwio = jnp.transpose(weight_oihw, (2, 3, 1, 0))
    y = jax.lax.conv_general_dilated(
        x_nhwc, w_hwio, window_strides=(1, 1), padding="SAME",
        dimension_numbers=("NHWC", "HWIO", "NHWC"))
    inv_std = jax.lax.rsqrt(running_var + eps)
    y = y * (gamma * inv_std) + (beta - running_mean * gamma * inv_std)
    y = jnp.where(y >= 0, y, NEG_SLOPE * y)
    return jnp.transpose(y, (0, 3, 1, 2))


if __name__ == "__main__":
    # Small shapes consistent with Down(in_channels=4, out_channels=8)
    N, Cin, H, W = 2, 4, 16, 16
    Cout = 8

    key = jax.random.PRNGKey(0)
    kx, kw, kg, kb, km, kv = jax.random.split(key, 6)

    x = jax.random.normal(kx, (N, Cin, H, W), jnp.float32)

    # deterministic synthetic parameters (PyTorch shapes: weight OIHW, BN per-channel)
    weight = 0.1 * jax.random.normal(kw, (Cout, Cin, 3, 3), jnp.float32)
    gamma = 1.0 + 0.1 * jax.random.normal(kg, (Cout,), jnp.float32)
    beta = 0.1 * jax.random.normal(kb, (Cout,), jnp.float32)
    running_mean = 0.1 * jax.random.normal(km, (Cout,), jnp.float32)
    running_var = 1.0 + 0.1 * jax.random.uniform(kv, (Cout,), jnp.float32)

    out = down_forward(x, weight, gamma, beta, running_mean, running_var)
    out = jax.block_until_ready(out)

    ref = down_reference(x, weight, gamma, beta, running_mean, running_var)
    assert out.shape == (N, Cout, H // 2, W // 2), out.shape
    assert jnp.allclose(out, ref, atol=2e-3, rtol=2e-3), float(
        jnp.max(jnp.abs(out - ref)))

    print("KERNEL_OK")
</pallas_src>

<mosaic_0001>
module attributes {stable_mosaic.version = 11 : i64} {
  func.func @_down_kernel(%arg0: i32, %arg1: memref<2x2x2x8x8x4xf32, #tpu.memory_space<vmem>>, %arg2: memref<36x8xf32, #tpu.memory_space<vmem>>, %arg3: memref<1x8xf32, #tpu.memory_space<vmem>>, %arg4: memref<2x8x8x8xf32, #tpu.memory_space<vmem>>) attributes {dimension_semantics = [#tpu.dimension_semantics<parallel>], iteration_bounds = array<i64: 1>, scalar_prefetch = 0 : i64, scratch_operands = 0 : i64, tpu.core_type = #tpu.core_type<tc>, window_params = [{transform_indices = @transform_0, window_bounds = array<i64: 2, 2, 2, 8, 8, 4>}, {pipeline_mode = #tpu.pipeline_mode<synchronous>, transform_indices = @transform_1, window_bounds = array<i64: 36, 8>}, {pipeline_mode = #tpu.pipeline_mode<synchronous>, transform_indices = @transform_2, window_bounds = array<i64: 1, 8>}, {transform_indices = @transform_3, window_bounds = array<i64: 2, 8, 8, 8>}]} {
    %c0 = arith.constant 0 : index
    %c0_0 = arith.constant 0 : index
    %c0_1 = arith.constant 0 : index
    %c0_2 = arith.constant 0 : index
    %c0_3 = arith.constant 0 : index
    %c0_4 = arith.constant 0 : index
    %0 = vector.load %arg1[%c0, %c0_0, %c0_1, %c0_2, %c0_3, %c0_4] : memref<2x2x2x8x8x4xf32, #tpu.memory_space<vmem>>, vector<1x1x1x8x8x4xf32>
    %1 = vector.shape_cast %0 : vector<1x1x1x8x8x4xf32> to vector<8x8x4xf32>
    %c0_5 = arith.constant 0 : index
    %c0_6 = arith.constant 0 : index
    %c1 = arith.constant 1 : index
    %c0_7 = arith.constant 0 : index
    %c0_8 = arith.constant 0 : index
    %c0_9 = arith.constant 0 : index
    %2 = vector.load %arg1[%c0_5, %c0_6, %c1, %c0_7, %c0_8, %c0_9] : memref<2x2x2x8x8x4xf32, #tpu.memory_space<vmem>>, vector<1x1x1x8x8x4xf32>
    %3 = vector.shape_cast %2 : vector<1x1x1x8x8x4xf32> to vector<8x8x4xf32>
    %4 = arith.maximumf %1, %3 : vector<8x8x4xf32>
    %c0_10 = arith.constant 0 : index
    %c1_11 = arith.constant 1 : index
    %c0_12 = arith.constant 0 : index
    %c0_13 = arith.constant 0 : index
    %c0_14 = arith.constant 0 : index
    %c0_15 = arith.constant 0 : index
    %5 = vector.load %arg1[%c0_10, %c1_11, %c0_12, %c0_13, %c0_14, %c0_15] : memref<2x2x2x8x8x4xf32, #tpu.memory_space<vmem>>, vector<1x1x1x8x8x4xf32>
    %6 = vector.shape_cast %5 : vector<1x1x1x8x8x4xf32> to vector<8x8x4xf32>
    %c0_16 = arith.constant 0 : index
    %c1_17 = arith.constant 1 : index
    %c1_18 = arith.constant 1 : index
    %c0_19 = arith.constant 0 : index
    %c0_20 = arith.constant 0 : index
    %c0_21 = arith.constant 0 : index
    %7 = vector.load %arg1[%c0_16, %c1_17, %c1_18, %c0_19, %c0_20, %c0_21] : memref<2x2x2x8x8x4xf32, #tpu.memory_space<vmem>>, vector<1x1x1x8x8x4xf32>
    %8 = vector.shape_cast %7 : vector<1x1x1x8x8x4xf32> to vector<8x8x4xf32>
    %9 = arith.maximumf %6, %8 : vector<8x8x4xf32>
    %10 = arith.maximumf %4, %9 : vector<8x8x4xf32>
    %cst = arith.constant 0.000000e+00 : f32
    %11 = vector.broadcast %cst : f32 to vector<8x1x4xf32>
    %cst_22 = arith.constant 0.000000e+00 : f32
    %12 = vector.broadcast %cst_22 : f32 to vector<1x10x4xf32>
    %13 = tpu.concatenate %11, %10, %11 in 1 : vector<8x1x4xf32>, vector<8x8x4xf32>, vector<8x1x4xf32> -> vector<8x10x4xf32>
    %14 = tpu.concatenate %12, %13, %12 in 0 : vector<1x10x4xf32>, vector<8x10x4xf32>, vector<1x10x4xf32> -> vector<10x10x4xf32>
    %15 = vector.extract_strided_slice %14 {offsets = [0, 0, 0], sizes = [8, 8, 4], strides = [1, 1, 1]} : vector<10x10x4xf32> to vector<8x8x4xf32>
    %16 = vector.shape_cast %15 : vector<8x8x4xf32> to vector<64x4xf32>
    %17 = vector.extract_strided_slice %14 {offsets = [0, 1, 0], sizes = [8, 8, 4], strides = [1, 1, 1]} : vector<10x10x4xf32> to vector<8x8x4xf32>
    %18 = vector.shape_cast %17 : vector<8x8x4xf32> to vector<64x4xf32>
    %19 = vector.extract_strided_slice %14 {offsets = [0, 2, 0], sizes = [8, 8, 4], strides = [1, 1, 1]} : vector<10x10x4xf32> to vector<8x8x4xf32>
    %20 = vector.shape_cast %19 : vector<8x8x4xf32> to vector<64x4xf32>
    %21 = vector.extract_strided_slice %14 {offsets = [1, 0, 0], sizes = [8, 8, 4], strides = [1, 1, 1]} : vector<10x10x4xf32> to vector<8x8x4xf32>
    %22 = vector.shape_cast %21 : vector<8x8x4xf32> to vector<64x4xf32>
    %23 = vector.extract_strided_slice %14 {offsets = [1, 1, 0], sizes = [8, 8, 4], strides = [1, 1, 1]} : vector<10x10x4xf32> to vector<8x8x4xf32>
    %24 = vector.shape_cast %23 : vector<8x8x4xf32> to vector<64x4xf32>
    %25 = vector.extract_strided_slice %14 {offsets = [1, 2, 0], sizes = [8, 8, 4], strides = [1, 1, 1]} : vector<10x10x4xf32> to vector<8x8x4xf32>
    %26 = vector.shape_cast %25 : vector<8x8x4xf32> to vector<64x4xf32>
    %27 = vector.extract_strided_slice %14 {offsets = [2, 0, 0], sizes = [8, 8, 4], strides = [1, 1, 1]} : vector<10x10x4xf32> to vector<8x8x4xf32>
    %28 = vector.shape_cast %27 : vector<8x8x4xf32> to vector<64x4xf32>
    %29 = vector.extract_strided_slice %14 {offsets = [2, 1, 0], sizes = [8, 8, 4], strides = [1, 1, 1]} : vector<10x10x4xf32> to vector<8x8x4xf32>
    %30 = vector.shape_cast %29 : vector<8x8x4xf32> to vector<64x4xf32>
    %31 = vector.extract_strided_slice %14 {offsets = [2, 2, 0], sizes = [8, 8, 4], strides = [1, 1, 1]} : vector<10x10x4xf32> to vector<8x8x4xf32>
    %32 = vector.shape_cast %31 : vector<8x8x4xf32> to vector<64x4xf32>
    %33 = tpu.concatenate %16, %18, %20, %22, %24, %26, %28, %30, %32 in 1 : vector<64x4xf32>, vector<64x4xf32>, vector<64x4xf32>, vector<64x4xf32>, vector<64x4xf32>, vector<64x4xf32>, vector<64x4xf32>, vector<64x4xf32>, vector<64x4xf32> -> vector<64x36xf32>
    %c1_23 = arith.constant 1 : index
    %c0_24 = arith.constant 0 : index
    %c0_25 = arith.constant 0 : index
    %c0_26 = arith.constant 0 : index
    %c0_27 = arith.constant 0 : index
    %c0_28 = arith.constant 0 : index
    %34 = vector.load %arg1[%c1_23, %c0_24, %c0_25, %c0_26, %c0_27, %c0_28] : memref<2x2x2x8x8x4xf32, #tpu.memory_space<vmem>>, vector<1x1x1x8x8x4xf32>
    %35 = vector.shape_cast %34 : vector<1x1x1x8x8x4xf32> to vector<8x8x4xf32>
    %c1_29 = arith.constant 1 : index
    %c0_30 = arith.constant 0 : index
    %c1_31 = arith.constant 1 : index
    %c0_32 = arith.constant 0 : index
    %c0_33 = arith.constant 0 : index
    %c0_34 = arith.constant 0 : index
    %36 = vector.load %arg1[%c1_29, %c0_30, %c1_31, %c0_32, %c0_33, %c0_34] : memref<2x2x2x8x8x4xf32, #tpu.memory_space<vmem>>, vector<1x1x1x8x8x4xf32>
    %37 = vector.shape_cast %36 : vector<1x1x1x8x8x4xf32> to vector<8x8x4xf32>
    %38 = arith.maximumf %35, %37 : vector<8x8x4xf32>
    %c1_35 = arith.constant 1 : index
    %c1_36 = arith.constant 1 : index
    %c0_37 = arith.constant 0 : index
    %c0_38 = arith.constant 0 : index
    %c0_39 = arith.constant 0 : index
    %c0_40 = arith.constant 0 : index
    %39 = vector.load %arg1[%c1_35, %c1_36, %c0_37, %c0_38, %c0_39, %c0_40] : memref<2x2x2x8x8x4xf32, #tpu.memory_space<vmem>>, vector<1x1x1x8x8x4xf32>
    %40 = vector.shape_cast %39 : vector<1x1x1x8x8x4xf32> to vector<8x8x4xf32>
    %c1_41 = arith.constant 1 : index
    %c1_42 = arith.constant 1 : index
    %c1_43 = arith.constant 1 : index
    %c0_44 = arith.constant 0 : index
    %c0_45 = arith.constant 0 : index
    %c0_46 = arith.constant 0 : index
    %41 = vector.load %arg1[%c1_41, %c1_42, %c1_43, %c0_44, %c0_45, %c0_46] : memref<2x2x2x8x8x4xf32, #tpu.memory_space<vmem>>, vector<1x1x1x8x8x4xf32>
    %42 = vector.shape_cast %41 : vector<1x1x1x8x8x4xf32> to vector<8x8x4xf32>
    %43 = arith.maximumf %40, %42 : vector<8x8x4xf32>
    %44 = arith.maximumf %38, %43 : vector<8x8x4xf32>
    %cst_47 = arith.constant 0.000000e+00 : f32
    %45 = vector.broadcast %cst_47 : f32 to vector<8x1x4xf32>
    %cst_48 = arith.constant 0.000000e+00 : f32
    %46 = vector.broadcast %cst_48 : f32 to vector<1x10x4xf32>
    %47 = tpu.concatenate %45, %44, %45 in 1 : vector<8x1x4xf32>, vector<8x8x4xf32>, vector<8x1x4xf32> -> vector<8x10x4xf32>
    %48 = tpu.concatenate %46, %47, %46 in 0 : vector<1x10x4xf32>, vector<8x10x4xf32>, vector<1x10x4xf32> -> vector<10x10x4xf32>
    %49 = vector.extract_strided_slice %48 {offsets = [0, 0, 0], sizes = [8, 8, 4], strides = [1, 1, 1]} : vector<10x10x4xf32> to vector<8x8x4xf32>
    %50 = vector.shape_cast %49 : vector<8x8x4xf32> to vector<64x4xf32>
    %51 = vector.extract_strided_slice %48 {offsets = [0, 1, 0], sizes = [8, 8, 4], strides = [1, 1, 1]} : vector<10x10x4xf32> to vector<8x8x4xf32>
    %52 = vector.shape_cast %51 : vector<8x8x4xf32> to vector<64x4xf32>
    %53 = vector.extract_strided_slice %48 {offsets = [0, 2, 0], sizes = [8, 8, 4], strides = [1, 1, 1]} : vector<10x10x4xf32> to vector<8x8x4xf32>
    %54 = vector.shape_cast %53 : vector<8x8x4xf32> to vector<64x4xf32>
    %55 = vector.extract_strided_slice %48 {offsets = [1, 0, 0], sizes = [8, 8, 4], strides = [1, 1, 1]} : vector<10x10x4xf32> to vector<8x8x4xf32>
    %56 = vector.shape_cast %55 : vector<8x8x4xf32> to vector<64x4xf32>
    %57 = vector.extract_strided_slice %48 {offsets = [1, 1, 0], sizes = [8, 8, 4], strides = [1, 1, 1]} : vector<10x10x4xf32> to vector<8x8x4xf32>
    %58 = vector.shape_cast %57 : vector<8x8x4xf32> to vector<64x4xf32>
    %59 = vector.extract_strided_slice %48 {offsets = [1, 2, 0], sizes = [8, 8, 4], strides = [1, 1, 1]} : vector<10x10x4xf32> to vector<8x8x4xf32>
    %60 = vector.shape_cast %59 : vector<8x8x4xf32> to vector<64x4xf32>
    %61 = vector.extract_strided_slice %48 {offsets = [2, 0, 0], sizes = [8, 8, 4], strides = [1, 1, 1]} : vector<10x10x4xf32> to vector<8x8x4xf32>
    %62 = vector.shape_cast %61 : vector<8x8x4xf32> to vector<64x4xf32>
    %63 = vector.extract_strided_slice %48 {offsets = [2, 1, 0], sizes = [8, 8, 4], strides = [1, 1, 1]} : vector<10x10x4xf32> to vector<8x8x4xf32>
    %64 = vector.shape_cast %63 : vector<8x8x4xf32> to vector<64x4xf32>
    %65 = vector.extract_strided_slice %48 {offsets = [2, 2, 0], sizes = [8, 8, 4], strides = [1, 1, 1]} : vector<10x10x4xf32> to vector<8x8x4xf32>
    %66 = vector.shape_cast %65 : vector<8x8x4xf32> to vector<64x4xf32>
    %67 = tpu.concatenate %50, %52, %54, %56, %58, %60, %62, %64, %66 in 1 : vector<64x4xf32>, vector<64x4xf32>, vector<64x4xf32>, vector<64x4xf32>, vector<64x4xf32>, vector<64x4xf32>, vector<64x4xf32>, vector<64x4xf32>, vector<64x4xf32> -> vector<64x36xf32>
    %68 = tpu.concatenate %33, %67 in 0 : vector<64x36xf32>, vector<64x36xf32> -> vector<128x36xf32>
    %c0_49 = arith.constant 0 : index
    %c0_50 = arith.constant 0 : index
    %69 = vector.load %arg2[%c0_49, %c0_50] : memref<36x8xf32, #tpu.memory_space<vmem>>, vector<36x8xf32>
    %cst_51 = arith.constant dense<0.000000e+00> : vector<128x8xf32>
    %70 = tpu.matmul %68, %69, %cst_51 {dimension_numbers = #tpu.dot_dimension_numbers<[1], [0], [0], [1], [0, 0, 1, 1], [], []>} : vector<128x36xf32>, vector<36x8xf32>, vector<128x8xf32> -> vector<128x8xf32>
    %c0_52 = arith.constant 0 : index
    %c0_53 = arith.constant 0 : index
    %71 = vector.load %arg3[%c0_52, %c0_53] : memref<1x8xf32, #tpu.memory_space<vmem>>, vector<1x8xf32>
    %72 = vector.broadcast %71 : vector<1x8xf32> to vector<128x8xf32>
    %73 = arith.addf %70, %72 : vector<128x8xf32>
    %cst_54 = arith.constant 0.000000e+00 : f32
    %74 = vector.broadcast %cst_54 : f32 to vector<128x8xf32>
    %75 = arith.cmpf oge, %73, %74 : vector<128x8xf32>
    %cst_55 = arith.constant 2.000000e-02 : f32
    %76 = vector.broadcast %cst_55 : f32 to vector<128x8xf32>
    %77 = arith.mulf %76, %73 : vector<128x8xf32>
    %78 = arith.select %75, %73, %77 : vector<128x8xi1>, vector<128x8xf32>
    %79 = vector.shape_cast %78 : vector<128x8xf32> to vector<2x8x8x8xf32>
    %c0_56 = arith.constant 0 : index
    %c0_57 = arith.constant 0 : index
    %c0_58 = arith.constant 0 : index
    %c0_59 = arith.constant 0 : index
    %80 = vector.load %arg4[%c0_56, %c0_57, %c0_58, %c0_59] : memref<2x8x8x8xf32, #tpu.memory_space<vmem>>, vector<2x8x8x8xf32>
    tpu.vector_store %arg4[%c0_56, %c0_57, %c0_58, %c0_59], %79 {strides = array<i32>} : memref<2x8x8x8xf32, #tpu.memory_space<vmem>>, vector<2x8x8x8xf32>,
    return
  }
  func.func @transform_0(%arg0: i32) -> (i32, i32, i32, i32, i32, i32) {
    %c0_i32 = arith.constant 0 : i32
    %c0_i32_0 = arith.constant 0 : i32
    %c0_i32_1 = arith.constant 0 : i32
    %c0_i32_2 = arith.constant 0 : i32
    %c0_i32_3 = arith.constant 0 : i32
    %c0_i32_4 = arith.constant 0 : i32
    return %arg0, %c0_i32, %c0_i32_0, %c0_i32_1, %c0_i32_2, %c0_i32_3 : i32, i32, i32, i32, i32, i32
  }
  func.func @transform_1(%arg0: i32) -> (i32, i32) {
    %c0_i32 = arith.constant 0 : i32
    %c0_i32_0 = arith.constant 0 : i32
    %c0_i32_1 = arith.constant 0 : i32
    return %c0_i32, %c0_i32_0 : i32, i32
  }
  func.func @transform_2(%arg0: i32) -> (i32, i32) {
    %c0_i32 = arith.constant 0 : i32
    %c0_i32_0 = arith.constant 0 : i32
    %c0_i32_1 = arith.constant 0 : i32
    return %c0_i32, %c0_i32_0 : i32, i32
  }
  func.func @transform_3(%arg0: i32) -> (i32, i32, i32, i32) {
    %c0_i32 = arith.constant 0 : i32
    %c0_i32_0 = arith.constant 0 : i32
    %c0_i32_1 = arith.constant 0 : i32
    %c0_i32_2 = arith.constant 0 : i32
    return %arg0, %c0_i32, %c0_i32_0, %c0_i32_1 : i32, i32, i32, i32
  }
}

</mosaic_0001>

<bundles_post_ra>
// kernel: down_forward.1
= control target key start
LH: loop header
LB: loop body
LE: loop exit
PB: predicated region body
PF: predicated region fallthrough
CT: control target
= control target key end

     0   :  { %v2269_v0 = vmov 0.0   ;;  %s1279_s24 = smov 8   ;;  %s1280_s25 = smov 4   ;;  %vm97_vm0 = vcmask 1040384   ;;  %vm129_vm1 = vcmask 1046528   ;;  %vm153_vm2 = vcmask 1045504   ;;  %s2265_s0 = inlined_call_operand.vmem [shape: f32[2,2,2,8,8,4], index: 0, kind: input, shape index: {}]   ;;  %s2266_s1 = inlined_call_operand.vmem [shape: f32[36,8], index: 1, kind: input, shape index: {}]   ;;  %s2267_s2 = inlined_call_operand.vmem [shape: f32[1,8], index: 2, kind: input, shape index: {}]   ;;  %s2268_s3 = inlined_call_operand.vmem [shape: f32[2,8,8,8], index: 3, kind: output, shape index: {}]  }
   0x1   :  { %v1308_v1 = vrot.slane %v2269_v0, 2  ;;  %v1311_v2 = vrot.slane %v2269_v0, 1  ;;  %v14_v3 = vld [vmem:[%s2265_s0] sm:$0xff]  ;;  %v15_v16 = vld [vmem:[%s2265_s0 + $0x8] sm:$0xff]  ;;  %s1281_s15 = smov 12   ;;  %v16_v50 = vld [vmem:[%s2265_s0 + $0x10] sm:$0xff] }
   0x2   :  { %v1130_v4 = vld [vmem:[%s2265_s0 + $0x40] sm:$0xff]  ;;  %v1131_v18 = vld [vmem:[%s2265_s0 + $0x48] sm:$0xff]  ;;  %v1132_v52 = vld [vmem:[%s2265_s0 + $0x50] sm:$0xff]  ;;  %s1282_s30 = smov 16   ;;  %s1283_s12 = smov 20   ;;  %vm913_vm3 = vcmask 1043456  }
   0x3   :  { %2273 = vst [vmem:[#allocation2_spill] sm:$0xff] %v1308_v1  ;;  %v1138_v5 = vld [vmem:[%s2265_s0 + $0x80] sm:$0xff]  ;;  %v31_v6 = vmax.f32 %v14_v3, %v1130_v4  ;;  %209 = vrot.lane.b32.xlu1 %v1308_v1, %s1279_s24  ;;  %185 = vrot.lane.b32.xlu0 %v1311_v2, %s1280_s25  ;;  %v1139_v19 = vld [vmem:[%s2265_s0 + $0x88] sm:$0xff]  ;;  %v32_v25 = vmax.f32 %v15_v16, %v1131_v18  ;;  %s1284_s13 = smov 24   ;;  %s1285_s23 = smov 28   ;;  %vm377_vm4 = vcmask 31744  }
   0x4   :  { %v1146_v7 = vld [vmem:[%s2265_s0 + $0xc0] sm:$0xff]  ;;  %v1147_v20 = vld [vmem:[%s2265_s0 + $0xc8] sm:$0xff]  ;;  %v1140_v53 = vld [vmem:[%s2265_s0 + $0x90] sm:$0xff]  ;;  %v33_v59 = vmax.f32 %v16_v50, %v1132_v52  ;;  %s1286_s19 = smov 32   ;;  %vm386_vm5 = vcmask 64512   ;;  %vm395_vm6 = vcmask 97280  }
   0x5   :  { %v1154_v8 = vld [vmem:[%s2265_s0 + $0x100] sm:$0xff]  ;;  %v57_v10 = vmax.f32 %v1138_v5, %v1146_v7  ;;  %v58_v26 = vmax.f32 %v1139_v19, %v1147_v20  ;;  %v1155_v27 = vld [vmem:[%s2265_s0 + $0x108] sm:$0xff]  ;;  %v1148_v54 = vld [vmem:[%s2265_s0 + $0xd0] sm:$0xff]  ;;  %vm404_vm7 = vcmask 130048   ;;  %vm413_vm8 = vcmask 162816  }
   0x6   :  { %v1162_v9 = vld [vmem:[%s2265_s0 + $0x140] sm:$0xff]  ;;  %v1163_v28 = vld [vmem:[%s2265_s0 + $0x148] sm:$0xff]  ;;  %v59_v60 = vmax.f32 %v1140_v53, %v1148_v54  ;;  %v1164_v7 = vld [vmem:[%s2265_s0 + $0x150] sm:$0xff]  ;;  %vm422_vm9 = vcmask 195584   ;;  %vm431_vm10 = vcmask 228352   ;;  %vm440_vm11 = vcmask 261120  }
   0x7   :  { %v467_v11 = vmax.f32 %v1154_v8, %v1162_v9  ;;  %v1170_v12 = vld [vmem:[%s2265_s0 + $0x180] sm:$0xff]  ;;  %v65_v15 = vmax.f32 %v31_v6, %v57_v10  ;;  %v1171_v33 = vld [vmem:[%s2265_s0 + $0x188] sm:$0xff]  ;;  %v468_v40 = vmax.f32 %v1155_v27, %v1163_v28  ;;  %v66_v45 = vmax.f32 %v32_v25, %v58_v26  ;;  %v1156_v6 = vld [vmem:[%s2265_s0 + $0x110] sm:$0xff] }
   0x8   :  { %v1178_v13 = vld [vmem:[%s2265_s0 + $0x1c0] sm:$0xff]  ;;  %v1179_v34 = vld [vmem:[%s2265_s0 + $0x1c8] sm:$0xff]  ;;  %v67_v5 = vmax.f32 %v33_v59, %v59_v60  ;;  %v1172_v8 = vld [vmem:[%s2265_s0 + $0x190] sm:$0xff]  ;;  %vm864_vm12 = vcmask 293888  }
   0x9   :  { %v493_v14 = vmax.f32 %v1170_v12, %v1178_v13  ;;  %v81_v21 = vrot.slane %v65_v15, 7  ;;  %v494_v41 = vmax.f32 %v1171_v33, %v1179_v34  ;;  %v82_v48 = vrot.slane %v66_v45, 7  ;;  %v1180_v9 = vld [vmem:[%s2265_s0 + $0x1d0] sm:$0xff]  ;;  %v1181_v50 = vld [vmem:[%s2265_s0 + $0x1d8] sm:$0xff]  ;;  %v856_v54 = vld [vmem:[%s2266_s1 + $0x20] sm:$0xf] }
   0xa   :  { %v469_v12 = vmax.f32 %v1156_v6, %v1164_v7  ;;  %v495_v13 = vmax.f32 %v1172_v8, %v1180_v9  ;;  %1225 = vmatprep.subr.msk.mxu0 %vm913_vm3, %v856_v54  ;;  %1259 = vmatprep.subr.msk.mxu1 %vm913_vm3, %v856_v54  ;;  %v854_v59 = vld [vmem:[%s2266_s1 + $0x10] sm:$0xff]  ;;  %v853_v60 = vld [vmem:[%s2266_s1 + $0x8] sm:$0xff]  ;;  %v18_v7 = vld [vmem:[%s2265_s0 + $0x20] sm:$0xff] }
   0xb   :  { %v501_v17 = vmax.f32 %v467_v11, %v493_v14  ;;  %v1354_v23 = vsel %vm97_vm0, 0.0, %v81_v21  ;;  %v106_v24 = vsel %vm97_vm0, %v81_v21, 0.0  ;;  %v502_v49 = vmax.f32 %v468_v40, %v494_v41  ;;  %v1149_v40 = vld [vmem:[%s2265_s0 + $0xd8] sm:$0xff]  ;;  %1226 = vmatpush3.msk.msra.mxu0 %vm913_vm3, %v856_v54  ;;  %1264 = vmatpush3.msk.msra.mxu1 %vm913_vm3, %v856_v54  ;;  %v1134_v8 = vld [vmem:[%s2265_s0 + $0x60] sm:$0xff]  ;;  %v1135_v54 = vld [vmem:[%s2265_s0 + $0x68] sm:$0xff] }
   0xc   :  { %233 = vrot.lane.b32.xlu1 %v1354_v23, %s1281_s15  ;;  %v132_v29 = vrot.slane %v1354_v23, 1  ;;  %v133_v30 = vrot.slane %v106_v24, 1  ;;  %v156_v32 = vrot.slane %v1354_v23, 2  ;;  %v157_v35 = vrot.slane %v106_v24, 2  ;;  %v1142_v9 = vld [vmem:[%s2265_s0 + $0xa0] sm:$0xff] }
   0xd   :  { %v517_v22 = vrot.slane %v501_v17, 7  ;;  %v107_v51 = vsel %vm97_vm0, %v82_v48, 0.0  ;;  %v1404_v55 = vsel %vm97_vm0, 0.0, %v82_v48  ;;  %v518_v56 = vrot.slane %v502_v49, 7  ;;  %v1165_v48 = vld [vmem:[%s2265_s0 + $0x158] sm:$0xff] }
   0xe   :  { %v134_v38 = vsel %vm129_vm1, %v132_v29, %v133_v30  ;;  %v158_v42 = vsel %vm153_vm2, %v156_v32, %v157_v35  ;;  %v135_v57 = vrot.slane %v1404_v55, 1  ;;  %v136_v58 = vrot.slane %v107_v51, 1  ;;  %v1173_v49 = vld [vmem:[%s2265_s0 + $0x198] sm:$0xff] }
   0xf   :  { %v1367_v31 = vsel %vm97_vm0, 0.0, %v517_v22  ;;  %v541_v36 = vsel %vm97_vm0, %v517_v22, 0.0  ;;  %187 = vrot.lane.b32.xlu0 %v134_v38, %s1280_s25  ;;  %v542_v61 = vsel %vm97_vm0, %v518_v56, 0.0  ;;  %v1412_v62 = vsel %vm97_vm0, 0.0, %v518_v56  ;;  %v855_v56 = vld [vmem:[%s2266_s1 + $0x18] sm:$0xff] }
  0x10   :  { %v563_v37 = vrot.slane %v1367_v31, 1  ;;  %v564_v39 = vrot.slane %v541_v36, 1  ;;  %655 = vrot.lane.b32.xlu1 %v1367_v31, %s1281_s15  ;;  %v584_v43 = vrot.slane %v1367_v31, 2  ;;  %v585_v44 = vrot.slane %v541_v36, 2  ;;  %1227 = vmatprep.subr.mxu0 %v855_v56 }
  0x11   :  { %v137_v63 = vsel %vm129_vm1, %v135_v57, %v136_v58  ;;  %v566_v3 = vrot.slane %v1412_v62, 1  ;;  %v567_v4 = vrot.slane %v542_v61, 1  ;;  %v83_v11 = vrot.slane %v67_v5, 7  ;;  %1228 = vmatpush3.msra.mxu0 %v855_v56  ;;  %1260 = vmatprep.subr.mxu1 %v855_v56 }
  0x12   :  { %v565_v46 = vsel %vm129_vm1, %v563_v37, %v564_v39  ;;  %v586_v47 = vsel %vm153_vm2, %v584_v43, %v585_v44  ;;  %v159_v14 = vrot.slane %v1404_v55, 2  ;;  %v160_v15 = vrot.slane %v107_v51, 2  ;;  %v17_v37 = vld [vmem:[%s2265_s0 + $0x18] sm:$0xff]  ;;  %1229 = vmatprep.subr.mxu0 %v854_v59  ;;  %1265 = vmatpush3.msra.mxu1 %v855_v56  ;;  %v1143_v56 = vld [vmem:[%s2265_s0 + $0xa8] sm:$0xff] }
  0x13   :  { %211 = vrot.lane.b32.xlu0 %v158_v42, %s1279_s24  ;;  %v568_v10 = vsel %vm129_vm1, %v566_v3, %v567_v4  ;;  %v1436_v16 = vsel %vm97_vm0, 0.0, %v83_v11  ;;  %v108_v17 = vsel %vm97_vm0, %v83_v11, 0.0  ;;  %v503_v18 = vmax.f32 %v469_v12, %v495_v13  ;;  %v1141_v39 = vld [vmem:[%s2265_s0 + $0x98] sm:$0xff]  ;;  %1230 = vmatpush3.msra.mxu0 %v854_v59 }
  0x14   :  { %613 = vrot.lane.b32.xlu1 %v565_v46, %s1280_s25  ;;  %v138_v19 = vrot.slane %v1436_v16, 1  ;;  %v139_v20 = vrot.slane %v108_v17, 1  ;;  %v1443_v21 = vsel %vm153_vm2, %v159_v14, %v160_v15  ;;  %v587_v25 = vrot.slane %v1412_v62, 2  ;;  %1231 = vmatprep.subr.mxu0 %v853_v60 }
  0x15   :  { %v519_v22 = vrot.slane %v503_v18, 7  ;;  %v588_v26 = vrot.slane %v542_v61, 2  ;;  %v162_v34 = vrot.slane %v1436_v16, 2  ;;  %v163_v35 = vrot.slane %v108_v17, 2  ;;  %1232 = vmatpush3.msra.mxu0 %v853_v60  ;;  %1261 = vmatprep.subr.mxu1 %v854_v59 }
  0x16   :  { %v1449_v24 = vsel %vm129_vm1, %v138_v19, %v139_v20  ;;  %v60_v44 = vmax.f32 %v1141_v39, %v1149_v40  ;;  %v496_v53 = vmax.f32 %v1173_v49, %v1181_v50  ;;  %1266 = vmatpush3.msra.mxu1 %v854_v59  ;;  %v35_v12 = vmax.f32 %v18_v7, %v1134_v8  ;;  %v1158_v19 = vld [vmem:[%s2265_s0 + $0x120] sm:$0xff] }
  0x17   :  { %634 = vrot.lane.b32.xlu0 %v586_v47, %s1279_s24  ;;  %v1453_v27 = vsel %vm97_vm0, 0.0, %v519_v22  ;;  %v543_v28 = vsel %vm97_vm0, %v519_v22, 0.0  ;;  %v1462_v32 = vsel %vm153_vm2, %v587_v25, %v588_v26  ;;  %v1481_v36 = vsel %vm153_vm2, %v162_v34, %v163_v35  ;;  %1262 = vmatprep.subr.mxu1 %v853_v60  ;;  %v1166_v20 = vld [vmem:[%s2265_s0 + $0x160] sm:$0xff] }
  0x18   :  { %257 = vrot.lane.b32.xlu1 %v134_v38, %s1282_s30  ;;  %v569_v29 = vrot.slane %v1453_v27, 1  ;;  %v570_v30 = vrot.slane %v543_v28, 1  ;;  %v1133_v38 = vld [vmem:[%s2265_s0 + $0x58] sm:$0xff]  ;;  %v590_v41 = vrot.slane %v1453_v27, 2  ;;  %1267 = vmatpush3.msra.mxu1 %v853_v60  ;;  %v1182_v22 = vld [vmem:[%s2265_s0 + $0x1e0] sm:$0xff]  ;;  %v471_v26 = vmax.f32 %v1158_v19, %v1166_v20 }
  0x19   :  { %v34_v43 = vmax.f32 %v17_v37, %v1133_v38 }
  0x1a   :  { %v1469_v33 = vsel %vm129_vm1, %v569_v29, %v570_v30 }
  0x1b   :  { %235 = vrot.lane.b32.xlu0 %v1404_v55, %s1281_s15 }
  0x1c   :  { %679 = vrot.lane.b32.xlu1 %v565_v46, %s1282_s30  ;;  %v68_v46 = vmax.f32 %v34_v43, %v60_v44 }
  0x1e   :  { %v84_v51 = vrot.slane %v68_v46, 7 }
  0x1f   :  { %657 = vrot.lane.b32.xlu0 %v1412_v62, %s1281_s15 }
  0x20   :  { %259 = vrot.lane.b32.xlu1 %v137_v63, %s1282_s30  ;;  %v1532_v57 = vsel %vm97_vm0, 0.0, %v84_v51  ;;  %v109_v3 = vsel %vm97_vm0, %v84_v51, 0.0 }
  0x21   :  { %v141_v5 = vrot.slane %v1532_v57, 1  ;;  %v142_v6 = vrot.slane %v109_v3, 1  ;;  %v165_v29 = vrot.slane %v1532_v57, 2  ;;  %v166_v30 = vrot.slane %v109_v3, 2 }
  0x23   :  { %189 = vrot.lane.b32.xlu0 %v137_v63, %s1280_s25  ;;  %v143_v11 = vsel %vm129_vm1, %v141_v5, %v142_v6  ;;  %v167_v37 = vsel %vm153_vm2, %v165_v29, %v166_v30 }
  0x24   :  { %615 = vrot.lane.b32.xlu1 %v568_v10, %s1280_s25 }
  0x27   :  { %281 = vrot.lane.b32.xlu0 %v158_v42, %s1283_s12  ;;  %v591_v42 = vrot.slane %v543_v28, 2 }
  0x28   :  { %703 = vrot.lane.b32.xlu1 %v586_v47, %s1283_s12  ;;  %v1157_v47 = vld [vmem:[%s2265_s0 + $0x118] sm:$0xff] }
  0x29   :  { %v1504_v45 = vsel %vm153_vm2, %v590_v41, %v591_v42  ;;  %v470_v52 = vmax.f32 %v1157_v47, %v1165_v48 }
  0x2b   :  { %681 = vrot.lane.b32.xlu0 %v568_v10, %s1282_s30  ;;  %v504_v58 = vmax.f32 %v470_v52, %v496_v53  ;;  %v19_v53 = vld [vmem:[%s2265_s0 + $0x28] sm:$0xff] }
  0x2c   :  { %213 = vrot.lane.b32.xlu1 %v1443_v21, %s1279_s24 }
  0x2d   :  { %v520_v61 = vrot.slane %v504_v58, 7  ;;  %v1151_v58 = vld [vmem:[%s2265_s0 + $0xe8] sm:$0xff] }
  0x2e   :  { %v62_v3 = vmax.f32 %v1143_v56, %v1151_v58 }
  0x2f   :  { %191 = vrot.lane.b32.xlu0 %v1449_v24, %s1280_s25  ;;  %v1553_v4 = vsel %vm97_vm0, 0.0, %v520_v61  ;;  %v544_v14 = vsel %vm97_vm0, %v520_v61, 0.0 }
  0x30   :  { %305 = vrot.lane.b32.xlu1 %v1404_v55, %s1284_s13  ;;  %v572_v15 = vrot.slane %v1553_v4, 1  ;;  %v573_v17 = vrot.slane %v544_v14, 1  ;;  %v593_v40 = vrot.slane %v1553_v4, 2  ;;  %v594_v41 = vrot.slane %v544_v14, 2 }
  0x32   :  { %v1628_v46 = vsel %vm153_vm2, %v593_v40, %v594_v41  ;;  %v1144_v40 = vld [vmem:[%s2265_s0 + $0xb0] sm:$0xff] }
  0x33   :  { %283 = vrot.lane.b32.xlu0 %v1443_v21, %s1283_s12  ;;  %v1152_v41 = vld [vmem:[%s2265_s0 + $0xf0] sm:$0xff] }
  0x34   :  { %636 = vrot.lane.b32.xlu1 %v1462_v32, %s1279_s24 }
  0x37   :  { %617 = vrot.lane.b32.xlu0 %v1469_v33, %s1280_s25 }
  0x38   :  { %727 = vrot.lane.b32.xlu1 %v1412_v62, %s1284_s13 }
  0x3b   :  { %705 = vrot.lane.b32.xlu0 %v1462_v32, %s1283_s12 }
  0x3c   :  { %237 = vrot.lane.b32.xlu1 %v1436_v16, %s1281_s15 }
  0x3f   :  { %215 = vrot.lane.b32.xlu0 %v1481_v36, %s1279_s24 }
  0x40   :  { %329 = vrot.lane.b32.xlu1 %v137_v63, %s1285_s23  ;;  %v852_v63 = vld [vmem:[%s2266_s1] sm:$0xff] }
  0x41   :  { %1233 = vmatprep.subr.mxu0 %v852_v63  ;;  %1263 = vmatprep.subr.mxu1 %v852_v63 }
  0x42   :  { %1234 = vmatpush3.msra.mxu0 %v852_v63  ;;  %1268 = vmatpush3.msra.mxu1 %v852_v63  ;;  %v36_v63 = vmax.f32 %v19_v53, %v1135_v54 }
  0x43   :  { %307 = vrot.lane.b32.xlu0 %v1436_v16, %s1284_s13 }
  0x44   :  { %659 = vrot.lane.b32.xlu1 %v1453_v27, %s1281_s15  ;;  %v70_v8 = vmax.f32 %v36_v63, %v62_v3  ;;  %v1168_v63 = vld [vmem:[%s2265_s0 + $0x170] sm:$0xff] }
  0x45   :  { %v1184_v3 = vld [vmem:[%s2265_s0 + $0x1f0] sm:$0xff] }
  0x47   :  { %638 = vrot.lane.b32.xlu0 %v1504_v45, %s1279_s24 }
  0x48   :  { %748 = vrot.lane.b32.xlu1 %v568_v10, %s1285_s23  ;;  %v1150_v10 = vld [vmem:[%s2265_s0 + $0xe0] sm:$0xff] }
  0x49   :  { %v61_v13 = vmax.f32 %v1142_v9, %v1150_v10  ;;  %v1159_v9 = vld [vmem:[%s2265_s0 + $0x128] sm:$0xff] }
  0x4b   :  { %729 = vrot.lane.b32.xlu0 %v1453_v27, %s1284_s13  ;;  %v69_v18 = vmax.f32 %v35_v12, %v61_v13  ;;  %v1175_v12 = vld [vmem:[%s2265_s0 + $0x1a8] sm:$0xff] }
  0x4c   :  { %261 = vrot.lane.b32.xlu1 %v1449_v24, %s1282_s30  ;;  %v1183_v13 = vld [vmem:[%s2265_s0 + $0x1e8] sm:$0xff] }
  0x4d   :  { %v85_v25 = vrot.slane %v69_v18, 7  ;;  %v498_v18 = vmax.f32 %v1175_v12, %v1183_v13 }
  0x4f   :  { %239 = vrot.lane.b32.xlu0 %v1532_v57, %s1281_s15 }
  0x50   :  { %353 = vrot.lane.b32.xlu1 %v1443_v21, %s1286_s19  ;;  %v1174_v21 = vld [vmem:[%s2265_s0 + $0x1a0] sm:$0xff] }
  0x51   :  { %v497_v28 = vmax.f32 %v1174_v21, %v1182_v22 }
  0x53   :  { %331 = vrot.lane.b32.xlu0 %v1449_v24, %s1285_s23  ;;  %v1594_v24 = vsel %vm129_vm1, %v572_v15, %v573_v17  ;;  %v505_v34 = vmax.f32 %v471_v26, %v497_v28  ;;  %v86_v15 = vrot.slane %v70_v8, 7 }
  0x54   :  { %683 = vrot.lane.b32.xlu1 %v1469_v33, %s1282_s30 }
  0x55   :  { %v521_v38 = vrot.slane %v505_v34, 7  ;;  %v1710_v21 = vsel %vm97_vm0, 0.0, %v86_v15  ;;  %v111_v30 = vsel %vm97_vm0, %v86_v15, 0.0 }
  0x56   :  { %2274 = vst [vmem:[#allocation3_spill] sm:$0xff] %v1710_v21 }
  0x57   :  { %661 = vrot.lane.b32.xlu0 %v1553_v4, %s1281_s15  ;;  %v1619_v42 = vsel %vm97_vm0, 0.0, %v521_v38  ;;  %v545_v43 = vsel %vm97_vm0, %v521_v38, 0.0 }
  0x58   :  { %769 = vrot.lane.b32.xlu1 %v1462_v32, %s1286_s19  ;;  %v1602_v32 = vsel %vm97_vm0, 0.0, %v85_v25  ;;  %v575_v44 = vrot.slane %v1619_v42, 1  ;;  %v596_v60 = vrot.slane %v1619_v42, 2  ;;  %v597_v61 = vrot.slane %v545_v43, 2 }
  0x59   :  { %v144_v35 = vrot.slane %v1602_v32, 1  ;;  %v168_v49 = vrot.slane %v1602_v32, 2 }
  0x5a   :  { %v1679_v7 = vsel %vm153_vm2, %v596_v60, %v597_v61  ;;  %v1160_v60 = vld [vmem:[%s2265_s0 + $0x130] sm:$0xff] }
  0x5b   :  { %750 = vrot.lane.b32.xlu0 %v1469_v33, %s1285_s23  ;;  %v110_v33 = vsel %vm97_vm0, %v85_v25, 0.0  ;;  %v473_v12 = vmax.f32 %v1160_v60, %v1168_v63 }
  0x5c   :  { %263 = vrot.lane.b32.xlu1 %v143_v11, %s1282_s30  ;;  %v169_v50 = vrot.slane %v110_v33, 2 }
  0x5e   :  { %v1650_v52 = vsel %vm153_vm2, %v168_v49, %v169_v50  ;;  %v63_v49 = vmax.f32 %v1144_v40, %v1152_v41 }
  0x5f   :  { %193 = vrot.lane.b32.xlu0 %v143_v11, %s1280_s25 }
  0x60   :  { %355 = vrot.lane.b32.xlu1 %v1481_v36, %s1286_s19 }
  0x63   :  { %285 = vrot.lane.b32.xlu0 %v1481_v36, %s1283_s12  ;;  %v145_v36 = vrot.slane %v110_v33, 1 }
  0x64   :  { %685 = vrot.lane.b32.xlu1 %v1594_v24, %s1282_s30 }
  0x65   :  { %v1615_v39 = vsel %vm129_vm1, %v144_v35, %v145_v36  ;;  %v147_v35 = vrot.slane %v1710_v21, 1  ;;  %v148_v36 = vrot.slane %v111_v30, 1 }
  0x67   :  { %619 = vrot.lane.b32.xlu0 %v1594_v24, %s1280_s25 }
  0x68   :  { %771 = vrot.lane.b32.xlu1 %v1504_v45, %s1286_s19 }
  0x6b   :  { %707 = vrot.lane.b32.xlu0 %v1504_v45, %s1283_s12  ;;  %v576_v45 = vrot.slane %v545_v43, 1 }
  0x6c   :  { %217 = vrot.lane.b32.xlu1 %v167_v37, %s1279_s24 }
  0x6d   :  { %v1634_v47 = vsel %vm129_vm1, %v575_v44, %v576_v45  ;;  %v1755_v44 = vsel %vm129_vm1, %v147_v35, %v148_v36 }
  0x6f   :  { %195 = vrot.lane.b32.xlu0 %v1615_v39, %s1280_s25 }
  0x70   :  { %309 = vrot.lane.b32.xlu1 %v1532_v57, %s1284_s13 }
  0x73   :  { %287 = vrot.lane.b32.xlu0 %v167_v37, %s1283_s12 }
  0x74   :  { %640 = vrot.lane.b32.xlu1 %v1628_v46, %s1279_s24 }
  0x75   :  { %v1640_v48 = vpop.permute.xlu1 %209  ;;  %v1645_v51 = vpop.permute.xlu0 %185 }
  0x77   :  { %621 = vrot.lane.b32.xlu0 %v1634_v47, %s1280_s25 }
  0x78   :  { %731 = vrot.lane.b32.xlu1 %v1553_v4, %s1284_s13 }
  0x7b   :  { %709 = vrot.lane.b32.xlu0 %v1628_v46, %s1283_s12 }
  0x7c   :  { %241 = vrot.lane.b32.xlu1 %v1602_v32, %s1281_s15 }
  0x7e   :  { %v1664_v59 = vpop.permute.xlu1 %233 }
  0x7f   :  { %219 = vrot.lane.b32.xlu0 %v1650_v52, %s1279_s24 }
  0x80   :  { %333 = vrot.lane.b32.xlu1 %v143_v11, %s1285_s23  ;;  %v1167_v11 = vld [vmem:[%s2265_s0 + $0x168] sm:$0xff] }
  0x81   :  { %v1670_v5 = vpop.permute.xlu0 %187  ;;  %v472_v17 = vmax.f32 %v1159_v9, %v1167_v11 }
  0x82   :  { %v1672_v6 = vpop.permute.xlu1 %655 }
  0x83   :  { %311 = vrot.lane.b32.xlu0 %v1602_v32, %s1284_s13  ;;  %v506_v22 = vmax.f32 %v472_v17, %v498_v18  ;;  %v171_v17 = vrot.slane %v1710_v21, 2 }
  0x84   :  { %663 = vrot.lane.b32.xlu1 %v1619_v42, %s1281_s15 }
  0x85   :  { %v1684_v10 = vpop.permute.xlu0 %211  ;;  %v522_v26 = vrot.slane %v506_v22, 7  ;;  %v172_v22 = vrot.slane %v111_v30, 2 }
  0x86   :  { %v1695_v14 = vpop.permute.xlu1 %613 }
  0x87   :  { %642 = vrot.lane.b32.xlu0 %v1679_v7, %s1279_s24  ;;  %v1729_v33 = vsel %vm97_vm0, 0.0, %v522_v26  ;;  %v546_v53 = vsel %vm97_vm0, %v522_v26, 0.0  ;;  %v1813_v30 = vsel %vm153_vm2, %v171_v17, %v172_v22 }
  0x88   :  { %752 = vrot.lane.b32.xlu1 %v1594_v24, %s1285_s23  ;;  %2275 = vst [vmem:[#allocation4_spill] sm:$0xff] %v1729_v33  ;;  %v579_v56 = vrot.slane %v546_v53, 1 }
  0x89   :  { %v1701_v19 = vpop.permute.xlu0 %634 }
  0x8a   :  { %v1703_v20 = vpop.permute.xlu1 %257 }
  0x8b   :  { %733 = vrot.lane.b32.xlu0 %v1619_v42, %s1284_s13 }
  0x8c   :  { %265 = vrot.lane.b32.xlu1 %v1615_v39, %s1282_s30 }
  0x8d   :  { %v1712_v25 = vpop.permute.xlu0 %235 }
  0x8e   :  { %v1714_v24 = vpop.permute.xlu1 %679 }
  0x8f   :  { %243 = vrot.lane.b32.xlu0 %v1710_v21, %s1281_s15 }
  0x90   :  { %357 = vrot.lane.b32.xlu1 %v167_v37, %s1286_s19  ;;  %v20_v37 = vld [vmem:[%s2265_s0 + $0x30] sm:$0xff] }
  0x91   :  { %v1719_v28 = vpop.permute.xlu0 %657 }
  0x92   :  { %v1721_v29 = vpop.permute.xlu1 %259 }
  0x93   :  { %335 = vrot.lane.b32.xlu0 %v1615_v39, %s1285_s23  ;;  %v1136_v39 = vld [vmem:[%s2265_s0 + $0x70] sm:$0xff] }
  0x94   :  { %687 = vrot.lane.b32.xlu1 %v1634_v47, %s1282_s30  ;;  %v37_v45 = vmax.f32 %v20_v37, %v1136_v39 }
  0x95   :  { %v1731_v34 = vpop.permute.xlu0 %189 }
  0x96   :  { %v1737_v38 = vpop.permute.xlu1 %615  ;;  %v71_v58 = vmax.f32 %v37_v45, %v63_v49 }
  0x97   :  { %665 = vrot.lane.b32.xlu0 %v1729_v33, %s1281_s15 }
  0x98   :  { %773 = vrot.lane.b32.xlu1 %v1628_v46, %s1286_s19  ;;  %v578_v46 = vrot.slane %v1729_v33, 1  ;;  %v87_v11 = vrot.slane %v71_v58, 7  ;;  %v600_v58 = vrot.slane %v546_v53, 2 }
  0x99   :  { %v1752_v43 = vpop.permute.xlu0 %281 }
  0x9a   :  { %v1757_v50 = vpop.permute.xlu1 %703  ;;  %v1788_v9 = vsel %vm129_vm1, %v578_v46, %v579_v56  ;;  %v1800_v26 = vsel %vm97_vm0, 0.0, %v87_v11  ;;  %v112_v35 = vsel %vm97_vm0, %v87_v11, 0.0  ;;  %v599_v56 = vrot.slane %v1729_v33, 2 }
  0x9b   :  { %754 = vrot.lane.b32.xlu0 %v1634_v47, %s1285_s23  ;;  %v1176_v47 = vld [vmem:[%s2265_s0 + $0x1b0] sm:$0xff]  ;;  %v151_v39 = vrot.slane %v112_v35, 1 }
  0x9c   :  { %267 = vrot.lane.b32.xlu1 %v1755_v44, %s1282_s30  ;;  %v499_v13 = vmax.f32 %v1176_v47, %v1184_v3  ;;  %v1840_v53 = vsel %vm153_vm2, %v599_v56, %v600_v58 }
  0x9d   :  { %v1764_v54 = vpop.permute.xlu0 %681 }
  0x9e   :  { %v1770_v61 = vpop.permute.xlu1 %213  ;;  %v507_v36 = vmax.f32 %v473_v12, %v499_v13 }
  0x9f   :  { %197 = vrot.lane.b32.xlu0 %v1755_v44, %s1280_s25 }
  0xa0   :  { %359 = vrot.lane.b32.xlu1 %v1650_v52, %s1286_s19  ;;  %v523_v41 = vrot.slane %v507_v36, 7  ;;  %v378_v36 = vsel %vm377_vm4, 0.0, %v1645_v51  ;;  %v21_v51 = vld [vmem:[%s2265_s0 + $0x38] sm:$0xff] }
  0xa1   :  { %v1785_v8 = vpop.permute.xlu0 %191  ;;  %v387_v58 = vsel %vm386_vm5, %v378_v36, %v1640_v48  ;;  %v1137_v48 = vld [vmem:[%s2265_s0 + $0x78] sm:$0xff] }
  0xa2   :  { %v1790_v15 = vpop.permute.xlu1 %305  ;;  %v1828_v60 = vsel %vm97_vm0, 0.0, %v523_v41  ;;  %v1831_v63 = vsel %vm97_vm0, %v523_v41, 0.0  ;;  %v1153_v36 = vld [vmem:[%s2265_s0 + $0xf8] sm:$0xff] }
  0xa3   :  { %289 = vrot.lane.b32.xlu0 %v1650_v52, %s1283_s12  ;;  %v150_v52 = vrot.slane %v1800_v26, 1  ;;  %v582_v3 = vrot.slane %v1831_v63, 1 }
  0xa4   :  { %689 = vrot.lane.b32.xlu1 %v1788_v9, %s1282_s30 }
  0xa5   :  { %v1797_v18 = vpop.permute.xlu0 %283  ;;  %v1822_v49 = vsel %vm129_vm1, %v150_v52, %v151_v39  ;;  %v174_v52 = vrot.slane %v1800_v26, 2  ;;  %v175_v39 = vrot.slane %v112_v35, 2  ;;  %v380_v35 = vsel %vm377_vm4, %v1404_v55, %v1731_v34 }
  0xa6   :  { %v1803_v37 = vpop.permute.xlu1 %636  ;;  %v389_v55 = vsel %vm386_vm5, %v380_v35, %v1770_v61  ;;  %v38_v61 = vmax.f32 %v21_v51, %v1137_v48 }
  0xa7   :  { %623 = vrot.lane.b32.xlu0 %v1788_v9, %s1280_s25 }
  0xa8   :  { %775 = vrot.lane.b32.xlu1 %v1679_v7, %s1286_s19 }
  0xa9   :  { %v1810_v40 = vpop.permute.xlu0 %617 }
  0xaa   :  { %v1815_v45 = vpop.permute.xlu1 %727 }
  0xab   :  { %711 = vrot.lane.b32.xlu0 %v1679_v7, %s1283_s12  ;;  %v581_v7 = vrot.slane %v1828_v60, 1 }
  0xac   :  { %221 = vrot.lane.b32.xlu1 %v1813_v30, %s1279_s24 }
  0xad   :  { %v1824_v46 = vpop.permute.xlu0 %705  ;;  %v1847_v13 = vsel %vm129_vm1, %v581_v7, %v582_v3  ;;  %v1875_v7 = vsel %vm153_vm2, %v174_v52, %v175_v39  ;;  %v1145_v3 = vld [vmem:[%s2265_s0 + $0xb8] sm:$0xff]  ;;  %v396_v52 = vsel %vm395_vm6, %v387_v58, %v1664_v59  ;;  %v381_v59 = vsel %vm377_vm4, %v1436_v16, %v1785_v8 }
  0xae   :  { %v238_v47 = vpop.permute.xlu1 %237  ;;  %v64_v35 = vmax.f32 %v1145_v3, %v1153_v36  ;;  %v791_v8 = vsel %vm377_vm4, %v1412_v62, %v1737_v38  ;;  %v1169_v62 = vld [vmem:[%s2265_s0 + $0x178] sm:$0xff]  ;;  %v804_v36 = vsel %vm395_vm6, %v387_v58, %v1672_v6  ;;  %v792_v6 = vsel %vm377_vm4, %v1453_v27, %v1810_v40 }
  0xaf   :  { %199 = vrot.lane.b32.xlu0 %v1822_v49, %s1280_s25  ;;  %v398_v39 = vsel %vm395_vm6, %v389_v55, %v238_v47  ;;  %v1177_v38 = vld [vmem:[%s2265_s0 + $0x1b8] sm:$0xff] }
  0xb0   :  { %313 = vrot.lane.b32.xlu1 %v1710_v21, %s1284_s13 }
  0xb1   :  { %v216_v11 = vpop.permute.xlu0 %215 }
  0xb2   :  { %v330_v12 = vpop.permute.xlu1 %329  ;;  %v390_v51 = vsel %vm386_vm5, %v381_v59, %v216_v11 }
  0xb3   :  { %291 = vrot.lane.b32.xlu0 %v1813_v30, %s1283_s12 }
  0xb4   :  { %644 = vrot.lane.b32.xlu1 %v1840_v53, %s1279_s24 }
  0xb5   :  { %v1849_v17 = vpop.permute.xlu0 %307 }
  0xb6   :  { %v660_v22 = vpop.permute.xlu1 %659 }
  0xb7   :  { %625 = vrot.lane.b32.xlu0 %v1847_v13, %s1280_s25 }
  0xb8   :  { %735 = vrot.lane.b32.xlu1 %v1729_v33, %s1284_s13  ;;  %v405_v33 = vsel %vm404_vm7, %v396_v52, %v1703_v20  ;;  %v602_v20 = vrot.slane %v1828_v60, 2 }
  0xb9   :  { %v1858_v41 = vpop.permute.xlu0 %638  ;;  %v414_v1 = vsel %vm413_vm8, %v405_v33, %v1752_v43 }
  0xba   :  { %v1860_v56 = vpop.permute.xlu1 %748  ;;  %v423_v47 = vsel %vm422_vm9, %v414_v1, %v1790_v15  ;;  %v1161_v15 = vld [vmem:[%s2265_s0 + $0x138] sm:$0xff]  ;;  %v799_v59 = vsel %vm386_vm5, %v792_v6, %v1858_v41 }
  0xbb   :  { %713 = vrot.lane.b32.xlu0 %v1840_v53, %s1283_s12  ;;  %v432_v33 = vsel %vm431_vm10, %v423_v47, %v330_v12  ;;  %v1185_v12 = vld [vmem:[%s2265_s0 + $0x1f8] sm:$0xff] }
  0xbc   :  { %245 = vrot.lane.b32.xlu1 %v1800_v26, %s1281_s15  ;;  %v500_v58 = vmax.f32 %v1177_v38, %v1185_v12 }
  0xbd   :  { %v1888_v34 = vpop.permute.xlu0 %729 }
  0xbe   :  { %v262_v0 = vpop.permute.xlu1 %261 }
  0xbf   :  { %v1896_v21 = vsel %vm404_vm7, %v398_v39, %v262_v0  ;;  %223 = vrot.lane.b32.xlu0 %v1875_v7, %s1279_s24  ;;  %v603_v0 = vrot.slane %v1831_v63, 2  ;;  %v798_v63 = vsel %vm386_vm5, %v791_v8, %v1803_v37  ;;  %v812_v37 = vsel %vm404_vm7, %v804_v36, %v1714_v24 }
  0xc0   :  { %337 = vrot.lane.b32.xlu1 %v1755_v44, %s1285_s23  ;;  %v72_v44 = vmax.f32 %v38_v61, %v64_v35  ;;  %v806_v55 = vsel %vm395_vm6, %v798_v63, %v660_v22  ;;  %v820_v35 = vsel %vm413_vm8, %v812_v37, %v1757_v50  ;;  %v474_v22 = vmax.f32 %v1161_v15, %v1169_v62 }
  0xc1   :  { %v240_v48 = vpop.permute.xlu0 %239  ;;  %v1924_v1 = vsel %vm153_vm2, %v602_v20, %v603_v0  ;;  %v828_v24 = vsel %vm422_vm9, %v820_v35, %v1815_v45 }
  0xc2   :  { %v399_v43 = vsel %vm395_vm6, %v390_v51, %v240_v48  ;;  %v354_v3 = vpop.permute.xlu1 %353  ;;  %v88_v61 = vrot.slane %v72_v44, 7  ;;  %v836_v0 = vsel %vm431_vm10, %v828_v24, %v1860_v56  ;;  %v508_v45 = vmax.f32 %v474_v22, %v500_v58 }
  0xc3   :  { %315 = vrot.lane.b32.xlu0 %v1800_v26, %s1284_s13  ;;  %v441_v16 = vsel %vm440_vm11, %v432_v33, %v354_v3 }
  0xc4   :  { %667 = vrot.lane.b32.xlu1 %v1828_v60, %s1281_s15  ;;  %1235 = vmatprep.mubr.msk.f32.mxu0 %vm864_vm12, %v441_v16  ;;  %v1974_v40 = vsel %vm97_vm0, 0.0, %v88_v61 }
  0xc5   :  { %v332_v11 = vpop.permute.xlu0 %331  ;;  %v182_v22 = vrot.slane %v1974_v40, 2 }
  0xc6   :  { %v684_v52 = vpop.permute.xlu1 %683 }
  0xc7   :  { %v1946_v39 = vsel %vm404_vm7, %v806_v55, %v684_v52  ;;  %646 = vrot.lane.b32.xlu0 %v1924_v1, %s1279_s24 }
  0xc8   :  { %756 = vrot.lane.b32.xlu1 %v1788_v9, %s1285_s23  ;;  %v379_v9 = vsel %vm377_vm4, %v1354_v23, %v1670_v5 }
  0xc9   :  { %v662_v20 = vpop.permute.xlu0 %661  ;;  %v388_v41 = vsel %vm386_vm5, %v379_v9, %v1684_v10  ;;  %v524_v10 = vrot.slane %v508_v45, 7 }
  0xca   :  { %v807_v50 = vsel %vm395_vm6, %v799_v59, %v662_v20  ;;  %v770_v47 = vpop.permute.xlu1 %769  ;;  %v397_v51 = vsel %vm395_vm6, %v388_v41, %v1712_v25 }
  0xcb   :  { %737 = vrot.lane.b32.xlu0 %v1828_v60, %s1284_s13  ;;  %v844_v27 = vsel %vm440_vm11, %v836_v0, %v770_v47  ;;  %v406_v23 = vsel %vm404_vm7, %v397_v51, %v1721_v29  ;;  %v790_v29 = vsel %vm377_vm4, %v1367_v31, %v1695_v14  ;;  %v113_v31 = vsel %vm97_vm0, %v88_v61, 0.0 }
  0xcc   :  { %269 = vrot.lane.b32.xlu1 %v1822_v49, %s1282_s30  ;;  %1247 = vmatprep.mubr.msk.f32.mxu1 %vm864_vm12, %v844_v27  ;;  %v415_v33 = vsel %vm413_vm8, %v406_v23, %v1797_v18  ;;  %v540_v18 = vsel %vm97_vm0, 0.0, %v524_v10  ;;  %v183_v58 = vrot.slane %v113_v31, 2 }
  0xcd   :  { %v751_v56 = vpop.permute.xlu0 %750  ;;  %v424_v25 = vsel %vm422_vm9, %v415_v33, %v1849_v17  ;;  %v607_v38 = vrot.slane %v540_v18, 1  ;;  %v610_v0 = vrot.slane %v540_v18, 2 }
  0xce   :  { %v264_v48 = vpop.permute.xlu1 %263 }
  0xcf   :  { %v1983_v5 = vsel %vm404_vm7, %v399_v43, %v264_v48  ;;  %247 = vrot.lane.b32.xlu0 %v1974_v40, %s1281_s15  ;;  %v433_v43 = vsel %vm431_vm10, %v424_v25, %v332_v11  ;;  %v179_v11 = vrot.slane %v1974_v40, 1  ;;  %v2276_v48 = vmov 0.0  }
  0xd0   :  { %361 = vrot.lane.b32.xlu1 %v1813_v30, %s1286_s19  ;;  %v797_v30 = vsel %vm386_vm5, %v790_v29, %v1701_v19 }
  0xd1   :  { %v194_v3 = vpop.permute.xlu0 %193  ;;  %v805_v17 = vsel %vm395_vm6, %v797_v30, %v1719_v28  ;;  %v180_v28 = vrot.slane %v113_v31, 1 }
  0xd2   :  { %v356_v16 = vpop.permute.xlu1 %355  ;;  %v813_v15 = vsel %vm404_vm7, %v805_v17, %v1764_v54  ;;  %v382_v37 = vsel %vm377_vm4, %v1532_v57, %v194_v3 }
  0xd3   :  { %v442_v44 = vsel %vm440_vm11, %v433_v43, %v356_v16  ;;  %339 = vrot.lane.b32.xlu0 %v1822_v49, %s1285_s23  ;;  %v548_v49 = vsel %vm97_vm0, %v524_v10, 0.0  ;;  %v821_v19 = vsel %vm413_vm8, %v813_v15, %v1824_v46  ;;  %v181_v46 = vsel %vm129_vm1, %v179_v11, %v180_v28 }
  0xd4   :  { %691 = vrot.lane.b32.xlu1 %v1847_v13, %s1282_s30  ;;  %1236 = vmatmul.mubr.msk.f32.vlgmr.msra.gmra.mxu0 %vm864_vm12, %v442_v44  ;;  %v829_v62 = vsel %vm422_vm9, %v821_v19, %v1888_v34  ;;  %v608_v54 = vrot.slane %v548_v49, 1  ;;  %v2277_v44 = vld [vmem:[#allocation2_spill] sm:$0xff] }
  0xd5   :  { %v2007_v14 = vpop.permute.xlu0 %285  ;;  %v837_v36 = vsel %vm431_vm10, %v829_v62, %v751_v56 }
  0xd6   :  { %v686_v8 = vpop.permute.xlu1 %685  ;;  %v609_v34 = vsel %vm129_vm1, %v607_v38, %v608_v54 }
  0xd7   :  { %v2015_v63 = vsel %vm404_vm7, %v807_v50, %v686_v8  ;;  %669 = vrot.lane.b32.xlu0 %v540_v18, %s1281_s15  ;;  %v611_v50 = vrot.slane %v548_v49, 2 }
  0xd8   :  { %777 = vrot.lane.b32.xlu1 %v1840_v53, %s1286_s19 }
  0xd9   :  { %v620_v12 = vpop.permute.xlu0 %619 }
  0xda   :  { %v772_v55 = vpop.permute.xlu1 %771  ;;  %v793_v57 = vsel %vm377_vm4, %v1553_v4, %v620_v12  ;;  %v612_v4 = vsel %vm153_vm2, %v610_v0, %v611_v50 }
  0xdb   :  { %v845_v52 = vsel %vm440_vm11, %v837_v36, %v772_v55  ;;  %758 = vrot.lane.b32.xlu0 %v1847_v13, %s1285_s23 }
  0xdc   :  { %293 = vrot.lane.b32.xlu1 %v1875_v7, %s1283_s12  ;;  %1248 = vmatmul.mubr.msk.f32.vlgmr.msra.gmra.mxu1 %vm864_vm12, %v845_v52 }
  0xdd   :  { %v2033_v53 = vpop.permute.xlu0 %707 }
  0xde   :  { %v218_v61 = vpop.permute.xlu1 %217 }
  0xdf   :  { %v391_v35 = vsel %vm386_vm5, %v382_v37, %v218_v61  ;;  %271 = vrot.lane.b32.xlu0 %v181_v46, %s1282_s30 }
  0xe0   :  { %693 = vrot.lane.b32.xlu1 %v609_v34, %s1282_s30 }
  0xe1   :  { %v196_v13 = vpop.permute.xlu0 %195 }
  0xe2   :  { %v310_v6 = vpop.permute.xlu1 %309 }
  0xe3   :  { %363 = vrot.lane.b32.xlu0 %v1875_v7, %s1286_s19  ;;  %v184_v7 = vsel %vm153_vm2, %v182_v22, %v183_v58 }
  0xe4   :  { %779 = vrot.lane.b32.xlu1 %v1924_v1, %s1286_s19 }
  0xe5   :  { %v288_v24 = vpop.permute.xlu0 %287 }
  0xe6   :  { %v641_v59 = vpop.permute.xlu1 %640 }
  0xe7   :  { %v800_v20 = vsel %vm386_vm5, %v793_v57, %v641_v59  ;;  %715 = vrot.lane.b32.xlu0 %v1924_v1, %s1283_s12  ;;  %v383_v1 = vsel %vm377_vm4, %v1602_v32, %v196_v13 }
  0xe8   :  { %317 = vrot.lane.b32.xlu1 %v1974_v40, %s1284_s13 }
  0xe9   :  { %v622_v47 = vpop.permute.xlu0 %621 }
  0xea   :  { %v732_v27 = vpop.permute.xlu1 %731  ;;  %v794_v32 = vsel %vm377_vm4, %v1619_v42, %v622_v47 }
  0xeb   :  { %295 = vrot.lane.b32.xlu0 %v184_v7, %s1283_s12 }
  0xec   :  { %739 = vrot.lane.b32.xlu1 %v540_v18, %s1284_s13  ;;  %v416_v18 = vsel %vm413_vm8, %v1896_v21, %v2007_v14  ;;  %v822_v21 = vsel %vm413_vm8, %v1946_v39, %v2033_v53  ;;  %v417_v39 = vsel %vm413_vm8, %v1983_v5, %v288_v24 }
  0xed   :  { %v710_v9 = vpop.permute.xlu0 %709  ;;  %v425_v30 = vsel %vm422_vm9, %v416_v18, %v310_v6  ;;  %v830_v14 = vsel %vm422_vm9, %v822_v21, %v732_v27 }
  0xee   :  { %v242_v45 = vpop.permute.xlu1 %241  ;;  %v823_v6 = vsel %vm413_vm8, %v2015_v63, %v710_v9 }
  0xef   :  { %v400_v41 = vsel %vm395_vm6, %v391_v35, %v242_v45  ;;  %717 = vrot.lane.b32.xlu0 %v612_v4, %s1283_s12 }
  0xf0   :  { %341 = vrot.lane.b32.xlu1 %v181_v46, %s1285_s23 }
  0xf1   :  { %v220_v40 = vpop.permute.xlu0 %219 }
  0xf2   :  { %v392_v56 = vsel %vm386_vm5, %v383_v1, %v220_v40  ;;  %v334_v51 = vpop.permute.xlu1 %333 }
  0xf3   :  { %319 = vrot.lane.b32.xlu0 %v2276_v48, %s1284_s13  ;;  %v434_v31 = vsel %vm431_vm10, %v425_v30, %v334_v51 }
  0xf4   :  { %343 = vrot.lane.b32.xlu1 %v1311_v2, %s1285_s23 }
  0xf5   :  { %v312_v23 = vpop.permute.xlu0 %311 }
  0xf6   :  { %v664_v33 = vpop.permute.xlu1 %663  ;;  %v426_v46 = vsel %vm422_vm9, %v417_v39, %v312_v23 }
  0xf7   :  { %v808_v10 = vsel %vm395_vm6, %v800_v20, %v664_v33  ;;  %760 = vrot.lane.b32.xlu0 %v609_v34, %s1285_s23  ;;  %v2278_v20 = vld [vmem:[#allocation3_spill] sm:$0xff] }
  0xf8   :  { %781 = vrot.lane.b32.xlu1 %v612_v4, %s1286_s19 }
  0xf9   :  { %v643_v25 = vpop.permute.xlu0 %642 }
  0xfa   :  { %v801_v3 = vsel %vm386_vm5, %v794_v32, %v643_v25  ;;  %v753_v29 = vpop.permute.xlu1 %752 }
  0xfb   :  { %365 = vrot.lane.b32.xlu0 %v184_v7, %s1286_s19  ;;  %v838_v62 = vsel %vm431_vm10, %v830_v14, %v753_v29 }
  0xfd   :  { %v734_v43 = vpop.permute.xlu0 %733 }
  0xfe   :  { %v266_v16 = vpop.permute.xlu1 %265  ;;  %v831_v22 = vsel %vm422_vm9, %v823_v6, %v734_v43  ;;  %v2279_v6 = vld [vmem:[#allocation4_spill] sm:$0xff] }
  0xff   :  { %v409_v2 = vsel %vm404_vm7, %v400_v41, %v266_v16  ;;  %367 = vrot.lane.b32.xlu0 %v2277_v44, %s1286_s19 }
 0x101   :  { %v244_v42 = vpop.permute.xlu0 %243 }
 0x102   :  { %v401_v17 = vsel %vm395_vm6, %v392_v56, %v244_v42  ;;  %v358_v8 = vpop.permute.xlu1 %357 }
 0x103   :  { %v443_v49 = vsel %vm440_vm11, %v434_v31, %v358_v8 }
 0x104   :  { %1238 = vmatprep.mubr.msk.f32.mxu0 %vm864_vm12, %v443_v49 }
 0x105   :  { %v336_v15 = vpop.permute.xlu0 %335 }
 0x106   :  { %v688_v19 = vpop.permute.xlu1 %687  ;;  %v435_v34 = vsel %vm431_vm10, %v426_v46, %v336_v15 }
 0x107   :  { %v816_v11 = vsel %vm404_vm7, %v808_v10, %v688_v19 }
 0x109   :  { %v666_v28 = vpop.permute.xlu0 %665 }
 0x10a   :  { %v2092_v38 = vsel %vm395_vm6, %v801_v3, %v666_v28  ;;  %v774_v12 = vpop.permute.xlu1 %773 }
 0x10b   :  { %v846_v54 = vsel %vm440_vm11, %v838_v62, %v774_v12 }
 0x10c   :  { %1250 = vmatprep.mubr.msk.f32.mxu1 %vm864_vm12, %v846_v54 }
 0x10d   :  { %v755_v36 = vpop.permute.xlu0 %754 }
 0x10e   :  { %v268_v55 = vpop.permute.xlu1 %267  ;;  %v839_v5 = vsel %vm431_vm10, %v831_v22, %v755_v36 }
 0x10f   :  { %v410_v52 = vsel %vm404_vm7, %v401_v17, %v268_v55 }
 0x111   :  { %v198_v53 = vpop.permute.xlu0 %197 }
 0x112   :  { %v360_v37 = vpop.permute.xlu1 %359  ;;  %v384_v0 = vsel %vm377_vm4, %v2278_v20, %v198_v53 }
 0x113   :  { %v444_v61 = vsel %vm440_vm11, %v435_v34, %v360_v37 }
 0x114   :  { %1239 = vmatmul.mubr.msk.f32.gmra.mxu0 %vm864_vm12, %v444_v61 }
 0x115   :  { %v290_v35 = vpop.permute.xlu0 %289 }
 0x116   :  { %v690_v13 = vpop.permute.xlu1 %689  ;;  %v418_v25 = vsel %vm413_vm8, %v409_v2, %v290_v35 }
 0x117   :  { %v817_v28 = vsel %vm404_vm7, %v2092_v38, %v690_v13 }
 0x119   :  { %v2106_v58 = vpop.permute.xlu0 %623 }
 0x11a   :  { %v776_v24 = vpop.permute.xlu1 %775  ;;  %v795_v22 = vsel %vm377_vm4, %v2279_v6, %v2106_v58 }
 0x11b   :  { %v847_v57 = vsel %vm440_vm11, %v839_v5, %v776_v24 }
 0x11c   :  { %1251 = vmatmul.mubr.msk.f32.gmra.mxu1 %vm864_vm12, %v847_v57 }
 0x11d   :  { %v712_v59 = vpop.permute.xlu0 %711 }
 0x11e   :  { %v222_v7 = vpop.permute.xlu1 %221  ;;  %v824_v42 = vsel %vm413_vm8, %v816_v11, %v712_v59 }
 0x11f   :  { %v2114_v50 = vsel %vm386_vm5, %v384_v0, %v222_v7 }
 0x121   :  { %v2116_v63 = vpop.permute.xlu0 %199 }
 0x122   :  { %v314_v47 = vpop.permute.xlu1 %313  ;;  %v385_v7 = vsel %vm377_vm4, %v1800_v26, %v2116_v63 }
 0x123   :  { %v427_v3 = vsel %vm422_vm9, %v418_v25, %v314_v47 }
 0x125   :  { %v292_v27 = vpop.permute.xlu0 %291 }
 0x126   :  { %v645_v4 = vpop.permute.xlu1 %644  ;;  %v419_v62 = vsel %vm413_vm8, %v410_v52, %v292_v27 }
 0x127   :  { %v802_v5 = vsel %vm386_vm5, %v795_v22, %v645_v4 }
 0x129   :  { %v626_v9 = vpop.permute.xlu0 %625 }
 0x12a   :  { %v736_v45 = vpop.permute.xlu1 %735  ;;  %v796_v47 = vsel %vm377_vm4, %v1828_v60, %v626_v9 }
 0x12b   :  { %v832_v31 = vsel %vm422_vm9, %v824_v42, %v736_v45  ;;  %v2183_v42 = vld [vmem:[%s2267_s2] ss:$0 sm:$0xff] }
 0x12d   :  { %v714_v41 = vpop.permute.xlu0 %713 }
 0x12e   :  { %v246_v1 = vpop.permute.xlu1 %245  ;;  %v825_v11 = vsel %vm413_vm8, %v817_v28, %v714_v41 }
 0x12f   :  { %v402_v58 = vsel %vm395_vm6, %v2114_v50, %v246_v1 }
 0x131   :  { %v224_v40 = vpop.permute.xlu0 %223 }
 0x132   :  { %v338_v56 = vpop.permute.xlu1 %337  ;;  %v394_v45 = vsel %vm386_vm5, %v385_v7, %v224_v40 }
 0x133   :  { %v436_v43 = vsel %vm431_vm10, %v427_v3, %v338_v56 }
 0x135   :  { %v316_v51 = vpop.permute.xlu0 %315 }
 0x136   :  { %v668_v48 = vpop.permute.xlu1 %667  ;;  %v428_v12 = vsel %vm422_vm9, %v419_v62, %v316_v51 }
 0x137   :  { %v810_v57 = vsel %vm395_vm6, %v802_v5, %v668_v48 }
 0x139   :  { %v647_v23 = vpop.permute.xlu0 %646 }
 0x13a   :  { %v757_v33 = vpop.permute.xlu1 %756  ;;  %v803_v41 = vsel %vm386_vm5, %v796_v47, %v647_v23 }
 0x13b   :  { %v840_v8 = vsel %vm431_vm10, %v832_v31, %v757_v33 }
 0x13d   :  { %v738_v10 = vpop.permute.xlu0 %737 }
 0x13e   :  { %v270_v32 = vpop.permute.xlu1 %269  ;;  %v833_v54 = vsel %vm422_vm9, %v825_v11, %v738_v10 }
 0x13f   :  { %v411_v56 = vsel %vm404_vm7, %v402_v58, %v270_v32 }
 0x141   :  { %v248_v29 = vpop.permute.xlu0 %247 }
 0x142   :  { %v362_v16 = vpop.permute.xlu1 %361  ;;  %v403_v26 = vsel %vm395_vm6, %v394_v45, %v248_v29 }
 0x143   :  { %v445_v44 = vsel %vm440_vm11, %v436_v43, %v362_v16 }
 0x144   :  { %1241 = vmatprep.mubr.msk.f32.mxu0 %vm864_vm12, %v445_v44 }
 0x145   :  { %v340_v18 = vpop.permute.xlu0 %339 }
 0x146   :  { %v692_v30 = vpop.permute.xlu1 %691  ;;  %v437_v36 = vsel %vm431_vm10, %v428_v12, %v340_v18 }
 0x147   :  { %v818_v20 = vsel %vm404_vm7, %v810_v57, %v692_v30 }
 0x149   :  { %v670_v17 = vpop.permute.xlu0 %669 }
 0x14a   :  { %v778_v2 = vpop.permute.xlu1 %777  ;;  %v811_v63 = vsel %vm395_vm6, %v803_v41, %v670_v17 }
 0x14b   :  { %v848_v49 = vsel %vm440_vm11, %v840_v8, %v778_v2 }
 0x14c   :  { %1253 = vmatprep.mubr.msk.f32.mxu1 %vm864_vm12, %v848_v49 }
 0x14d   :  { %v759_v15 = vpop.permute.xlu0 %758 }
 0x14e   :  { %v294_v19 = vpop.permute.xlu1 %293  ;;  %v841_v39 = vsel %vm431_vm10, %v833_v54, %v759_v15 }
 0x14f   :  { %v420_v60 = vsel %vm413_vm8, %v411_v56, %v294_v19 }
 0x151   :  { %v272_v21 = vpop.permute.xlu0 %271 }
 0x152   :  { %v694_v14 = vpop.permute.xlu1 %693  ;;  %v412_v9 = vsel %vm404_vm7, %v403_v26, %v272_v21 }
 0x153   :  { %v819_v1 = vsel %vm404_vm7, %v811_v63, %v694_v14 }
 0x155   :  { %v364_v55 = vpop.permute.xlu0 %363 }
 0x156   :  { %v446_v46 = vsel %vm440_vm11, %v437_v36, %v364_v55  ;;  %v780_v53 = vpop.permute.xlu1 %779 }
 0x157   :  { %v849_v34 = vsel %vm440_vm11, %v841_v39, %v780_v53  ;;  %1242 = vmatmul.mubr.msk.f32.gmra.mxu0 %vm864_vm12, %v446_v46 }
 0x158   :  { %1254 = vmatmul.mubr.msk.f32.gmra.mxu1 %vm864_vm12, %v849_v34 }
 0x159   :  { %v716_v38 = vpop.permute.xlu0 %715 }
 0x15a   :  { %v318_v52 = vpop.permute.xlu1 %317  ;;  %v826_v0 = vsel %vm413_vm8, %v818_v20, %v716_v38 }
 0x15b   :  { %v429_v40 = vsel %vm422_vm9, %v420_v60, %v318_v52 }
 0x15d   :  { %v296_v37 = vpop.permute.xlu0 %295 }
 0x15e   :  { %v740_v61 = vpop.permute.xlu1 %739  ;;  %v421_v23 = vsel %vm413_vm8, %v412_v9, %v296_v37 }
 0x15f   :  { %v834_v27 = vsel %vm422_vm9, %v826_v0, %v740_v61 }
 0x161   :  { %v718_v35 = vpop.permute.xlu0 %717 }
 0x162   :  { %v342_v13 = vpop.permute.xlu1 %341  ;;  %v827_v33 = vsel %vm413_vm8, %v819_v1, %v718_v35 }
 0x163   :  { %v438_v10 = vsel %vm431_vm10, %v429_v40, %v342_v13 }
 0x165   :  { %v320_v24 = vpop.permute.xlu0 %319 }
 0x166   :  { %v344_v59 = vpop.permute.xlu1 %343  ;;  %v430_v25 = vsel %vm422_vm9, %v421_v23, %v320_v24  ;;  %v835_v3 = vsel %vm422_vm9, %v827_v33, %v320_v24 }
 0x167   :  { %v439_v43 = vsel %vm431_vm10, %v430_v25, %v344_v59  ;;  %v843_v16 = vsel %vm431_vm10, %v835_v3, %v344_v59 }
 0x169   :  { %v761_v4 = vpop.permute.xlu0 %760 }
 0x16a   :  { %v842_v51 = vsel %vm431_vm10, %v834_v27, %v761_v4  ;;  %v782_v48 = vpop.permute.xlu1 %781 }
 0x16b   :  { %v850_v50 = vsel %vm440_vm11, %v842_v51, %v782_v48 }
 0x16c   :  { %1256 = vmatprep.mubr.msk.f32.mxu1 %vm864_vm12, %v850_v50 }
 0x16d   :  { %v366_v32 = vpop.permute.xlu0 %365 }
 0x16e   :  { %v447_v29 = vsel %vm440_vm11, %v438_v10, %v366_v32 }
 0x16f   :  { %1244 = vmatprep.mubr.msk.f32.mxu0 %vm864_vm12, %v447_v29 }
 0x171   :  { %v368_v44 = vpop.permute.xlu0 %367 }
 0x172   :  { %v448_v18 = vsel %vm440_vm11, %v439_v43, %v368_v44  ;;  %v851_v30 = vsel %vm440_vm11, %v843_v16, %v368_v44 }
 0x173   :  { %1245 = vmatmul.mubr.msk.f32.gmra.mxu0 %vm864_vm12, %v448_v18  ;;  %1257 = vmatmul.mubr.msk.f32.gmra.mxu1 %vm864_vm12, %v851_v30 }
 0x194   :  { %v1237_v31 = vpop.f32.mrf.mxu0 }
 0x195   :  { %v989_v17 = vadd.f32 %v1237_v31, %v2183_v42 }
 0x196   :  { %v983_v8 = vpop.f32.mrf.mxu0 }
 0x197   :  { %vm1063_vm13 = vcmp.ge.f32.partialorder %v989_v17, 0.0  ;;  %v1079_v2 = vmul.f32 0.02, %v989_v17  ;;  %v984_v49 = vadd.f32 %v2183_v42, %v983_v8 }
 0x199   :  { %v1095_v15 = vsel %vm1063_vm13, %v989_v17, %v1079_v2  ;;  %vm1062_vm14 = vcmp.ge.f32.partialorder %v984_v49, 0.0  ;;  %v1078_v19 = vmul.f32 0.02, %v984_v49 }
 0x19a   :  { %1111 = vst.msk [vmem:[%s2268_s3 + $0x8] sm:$0xff] %vm386_vm5, %v1095_v15 }
 0x19b   :  { %v1094_v21 = vsel %vm1062_vm14, %v984_v49, %v1078_v19 }
 0x19c   :  { %1110 = vst.msk [vmem:[%s2268_s3] sm:$0xff] %vm386_vm5, %v1094_v21  ;;  %v1249_v14 = vpop.f32.mrf.mxu1 }
 0x19d   :  { %v1029_v28 = vadd.f32 %v1249_v14, %v2183_v42 }
 0x19e   :  { %v1023_v62 = vpop.f32.mrf.mxu1 }
 0x19f   :  { %vm1071_vm15 = vcmp.ge.f32.partialorder %v1029_v28, 0.0  ;;  %v1087_v11 = vmul.f32 0.02, %v1029_v28  ;;  %v1024_v12 = vadd.f32 %v2183_v42, %v1023_v62 }
 0x1a1   :  { %v1103_v54 = vsel %vm1071_vm15, %v1029_v28, %v1087_v11  ;;  %vm1070_vm0 = vcmp.ge.f32.partialorder %v1024_v12, 0.0  ;;  %v1086_v36 = vmul.f32 0.02, %v1024_v12 }
 0x1a2   :  { %1119 = vst.msk [vmem:[%s2268_s3 + $0x48] sm:$0xff] %vm386_vm5, %v1103_v54 }
 0x1a3   :  { %v1102_v55 = vsel %vm1070_vm0, %v1024_v12, %v1086_v36 }
 0x1a4   :  { %1118 = vst.msk [vmem:[%s2268_s3 + $0x40] sm:$0xff] %vm386_vm5, %v1102_v55 }
 0x1d4   :  { %v1240_v39 = vpop.f32.mrf.mxu0 }
 0x1d5   :  { %v999_v46 = vadd.f32 %v1240_v39, %v2183_v42 }
 0x1d6   :  { %v993_v53 = vpop.f32.mrf.mxu0 }
 0x1d7   :  { %vm1065_vm1 = vcmp.ge.f32.partialorder %v999_v46, 0.0  ;;  %v1081_v34 = vmul.f32 0.02, %v999_v46  ;;  %v994_v38 = vadd.f32 %v2183_v42, %v993_v53 }
 0x1d9   :  { %v1097_v52 = vsel %vm1065_vm1, %v999_v46, %v1081_v34  ;;  %vm1064_vm2 = vcmp.ge.f32.partialorder %v994_v38, 0.0  ;;  %v1080_v37 = vmul.f32 0.02, %v994_v38 }
 0x1da   :  { %1113 = vst.msk [vmem:[%s2268_s3 + $0x18] sm:$0xff] %vm386_vm5, %v1097_v52 }
 0x1db   :  { %v1096_v61 = vsel %vm1064_vm2, %v994_v38, %v1080_v37 }
 0x1dc   :  { %1112 = vst.msk [vmem:[%s2268_s3 + $0x10] sm:$0xff] %vm386_vm5, %v1096_v61  ;;  %v1252_v35 = vpop.f32.mrf.mxu1 }
 0x1dd   :  { %v1039_v13 = vadd.f32 %v1252_v35, %v2183_v42 }
 0x1de   :  { %v1033_v6 = vpop.f32.mrf.mxu1 }
 0x1df   :  { %vm1073_vm3 = vcmp.ge.f32.partialorder %v1039_v13, 0.0  ;;  %v1089_v22 = vmul.f32 0.02, %v1039_v13  ;;  %v1034_v5 = vadd.f32 %v2183_v42, %v1033_v6 }
 0x1e1   :  { %v1105_v24 = vsel %vm1073_vm3, %v1039_v13, %v1089_v22  ;;  %vm1072_vm4 = vcmp.ge.f32.partialorder %v1034_v5, 0.0  ;;  %v1088_v57 = vmul.f32 0.02, %v1034_v5 }
 0x1e2   :  { %1121 = vst.msk [vmem:[%s2268_s3 + $0x58] sm:$0xff] %vm386_vm5, %v1105_v24 }
 0x1e3   :  { %v1104_v59 = vsel %vm1072_vm4, %v1034_v5, %v1088_v57 }
 0x1e4   :  { %1120 = vst.msk [vmem:[%s2268_s3 + $0x50] sm:$0xff] %vm386_vm5, %v1104_v59 }
 0x217   :  { %v1243_v20 = vpop.f32.mrf.mxu0 }
 0x218   :  { %v1009_v0 = vadd.f32 %v1243_v20, %v2183_v42  ;;  %v1255_v7 = vpop.f32.mrf.mxu1 }
 0x219   :  { %v1049_v47 = vadd.f32 %v1255_v7, %v2183_v42  ;;  %v1003_v58 = vpop.f32.mrf.mxu0 }
 0x21a   :  { %vm1067_vm6 = vcmp.ge.f32.partialorder %v1009_v0, 0.0  ;;  %v1083_v27 = vmul.f32 0.02, %v1009_v0  ;;  %v1004_v4 = vadd.f32 %v2183_v42, %v1003_v58  ;;  %v1043_v45 = vpop.f32.mrf.mxu1 }
 0x21b   :  { %vm1075_vm7 = vcmp.ge.f32.partialorder %v1049_v47, 0.0  ;;  %v1091_v41 = vmul.f32 0.02, %v1049_v47  ;;  %v1044_v56 = vadd.f32 %v2183_v42, %v1043_v45 }
 0x21c   :  { %v1099_v51 = vsel %vm1067_vm6, %v1009_v0, %v1083_v27  ;;  %vm1066_vm8 = vcmp.ge.f32.partialorder %v1004_v4, 0.0  ;;  %v1082_v48 = vmul.f32 0.02, %v1004_v4 }
 0x21d   :  { %1115 = vst.msk [vmem:[%s2268_s3 + $0x28] sm:$0xff] %vm386_vm5, %v1099_v51  ;;  %v1107_v26 = vsel %vm1075_vm7, %v1049_v47, %v1091_v41  ;;  %vm1074_vm9 = vcmp.ge.f32.partialorder %v1044_v56, 0.0  ;;  %v1090_v63 = vmul.f32 0.02, %v1044_v56 }
 0x21e   :  { %1123 = vst.msk [vmem:[%s2268_s3 + $0x68] sm:$0xff] %vm386_vm5, %v1107_v26  ;;  %v1098_v60 = vsel %vm1066_vm8, %v1004_v4, %v1082_v48 }
 0x21f   :  { %1114 = vst.msk [vmem:[%s2268_s3 + $0x20] sm:$0xff] %vm386_vm5, %v1098_v60  ;;  %v1106_v50 = vsel %vm1074_vm9, %v1044_v56, %v1090_v63 }
 0x220   :  { %1122 = vst.msk [vmem:[%s2268_s3 + $0x60] sm:$0xff] %vm386_vm5, %v1106_v50 }
 0x233   :  { %v1246_v9 = vpop.f32.mrf.mxu0  ;;  %v1258_v1 = vpop.f32.mrf.mxu1 }
 0x234   :  { %v1019_v40 = vadd.f32 %v1246_v9, %v2183_v42  ;;  %v1059_v23 = vadd.f32 %v1258_v1, %v2183_v42 }
 0x235   :  { %v1013_v33 = vpop.f32.mrf.mxu0  ;;  %v1053_v10 = vpop.f32.mrf.mxu1 }
 0x236   :  { %vm1069_vm10 = vcmp.ge.f32.partialorder %v1019_v40, 0.0  ;;  %v1085_v32 = vmul.f32 0.02, %v1019_v40  ;;  %vm1077_vm11 = vcmp.ge.f32.partialorder %v1059_v23, 0.0  ;;  %v1093_v25 = vmul.f32 0.02, %v1059_v23 }
 0x237   :  { %v1014_v3 = vadd.f32 %v2183_v42, %v1013_v33  ;;  %v1054_v29 = vadd.f32 %v2183_v42, %v1053_v10 }
 0x238   :  { %v1101_v43 = vsel %vm1069_vm10, %v1019_v40, %v1085_v32  ;;  %v1109_v16 = vsel %vm1077_vm11, %v1059_v23, %v1093_v25 }
 0x239   :  { %1117 = vst.msk [vmem:[%s2268_s3 + $0x38] sm:$0xff] %vm386_vm5, %v1101_v43  ;;  %1125 = vst.msk [vmem:[%s2268_s3 + $0x78] sm:$0xff] %vm386_vm5, %v1109_v16  ;;  %vm1068_vm12 = vcmp.ge.f32.partialorder %v1014_v3, 0.0  ;;  %v1084_v44 = vmul.f32 0.02, %v1014_v3  ;;  %vm1076_vm13 = vcmp.ge.f32.partialorder %v1054_v29, 0.0 }
 0x23a   :  { %v1092_v18 = vmul.f32 0.02, %v1054_v29 }
 0x23b   :  { %v1100_v30 = vsel %vm1068_vm12, %v1014_v3, %v1084_v44 }
 0x23c   :  { %v1108_v31 = vsel %vm1076_vm13, %v1054_v29, %v1092_v18  ;;  %1116 = vst.msk [vmem:[%s2268_s3 + $0x30] sm:$0xff] %vm386_vm5, %v1100_v30 }
 0x23d   :  { %1124 = vst.msk [vmem:[%s2268_s3 + $0x70] sm:$0xff] %vm386_vm5, %v1108_v31 }

</bundles_post_ra>
